<compile_context>
chip_gen: v6e
topology: v6e:2x2x1
jax: 0.10.0
libtpu: 0.0.40
codegen_flags: <defaults>
</compile_context>

<pallas_src>
import jax
import jax.numpy as jnp
from jax.experimental import pallas as pl
from jax.experimental.pallas import tpu as pltpu

_HIDDEN = (320, 360, 620, 440)
_LANE = 128
_SUBLANE = 8
_MAX_TB = 512


def _round_up(n, m):
    return ((n + m - 1) // m) * m


def _softplus(x):
    # Matches torch.nn.Softplus(beta=1, threshold=20):
    #   x                  if x > 20
    #   log1p(exp(x))      otherwise (computed stably)
    return jnp.where(x > 20.0, x, jnp.log1p(jnp.exp(jnp.minimum(x, 20.0))))


def mlp_kernel(x_ref,
               w1_ref, b1_ref,
               w2_ref, b2_ref,
               w3_ref, b3_ref,
               w4_ref, b4_ref,
               w5_ref, b5_ref,
               o_ref):
    # bf16 matmul operands (native MXU path), f32 accumulation; bias-add + ReLU in f32,
    # activations carried layer-to-layer in bf16.
    def dense(h_bf16, w_ref, b_ref):
        return jnp.dot(h_bf16, w_ref[...],
                       preferred_element_type=jnp.float32) + b_ref[...]

    def dense_relu(h_bf16, w_ref, b_ref):
        return jnp.maximum(dense(h_bf16, w_ref, b_ref), 0.0).astype(jnp.bfloat16)

    h = x_ref[...].astype(jnp.bfloat16)         # (TB, in_p)
    h = dense_relu(h, w1_ref, b1_ref)           # Linear + ReLU
    # Dropout(p=0.8): identity in eval mode.
    h = dense_relu(h, w2_ref, b2_ref)
    h = dense_relu(h, w3_ref, b3_ref)
    h = dense_relu(h, w4_ref, b4_ref)
    z = dense(h, w5_ref, b5_ref)                # Linear (f32) + Softplus
    o_ref[...] = _softplus(z).astype(o_ref.dtype)


def _pack_params(params, input_channel, output_channel):
    """Pad hidden/output feature dims to multiples of 128 (lane-dense), the input dim
    only to a multiple of 16 (bf16 sublane packing); weights -> bf16, biases -> (1, N) f32.
    Padded rows/cols/biases are zero, so padded lanes stay exactly 0 through ReLU."""
    dims = [input_channel] + list(_HIDDEN) + [output_channel]
    padded = [_round_up(dims[0], 16)] + [_round_up(d, _LANE) for d in dims[1:]]
    flat = []
    for i, (w, b) in enumerate(params):
        fi, fo = dims[i], dims[i + 1]
        pi, po = padded[i], padded[i + 1]
        wp = jnp.zeros((pi, po), jnp.bfloat16).at[:fi, :fo].set(
            w.astype(jnp.bfloat16))
        bp = jnp.zeros((1, po), jnp.float32).at[:, :fo].set(
            b.reshape(1, -1).astype(jnp.float32))
        flat.append(wp)
        flat.append(bp)
    return flat, dims, padded


def _pick_batch_tile(B):
    """Batch tile:
      - tiny batches (<=16 rows): one block (no point splitting),
      - moderate batches: two grid steps so v7x's 2nd TensorCore isn't idle,
      - large batches: TB=512 (good per-step amortization, fits v5e's 16 MiB VMEM)."""
    b_sub = _round_up(B, _SUBLANE)
    if b_sub <= 2 * _SUBLANE:
        return b_sub
    if b_sub <= 2 * _MAX_TB:
        return _round_up(pl.cdiv(b_sub, 2), _SUBLANE)
    return _MAX_TB


def msci_model_forward(x, params):
    """x: (B, input_channel) f32; params: list of (W, b) with W in (in, out) layout."""
    B, in_c = x.shape
    out_c = params[-1][0].shape[1]

    flat, dims, padded = _pack_params(params, in_c, out_c)
    in_p, out_p = padded[0], padded[-1]

    # Feed x at (almost) its real feature width — no 128-lane inflation in HBM.
    if in_p != in_c:
        x = jnp.pad(x, ((0, 0), (0, in_p - in_c)))

    TB = _pick_batch_tile(B)
    Bp = _round_up(B, TB)
    if Bp != B:
        x = jnp.pad(x, ((0, Bp - B), (0, 0)))   # batch-tail pad only
    grid = (Bp // TB,)

    # x/out blocks walk the batch; weight/bias blocks have a constant index_map so
    # they stay VMEM-resident across all grid steps (fetched once).
    x_spec = pl.BlockSpec((TB, in_p), lambda i: (i, 0))
    out_spec = pl.BlockSpec((TB, out_p), lambda i: (i, 0))
    resident_specs = [pl.BlockSpec(a.shape, lambda i: (0, 0)) for a in flat]
    in_specs = [x_spec] + resident_specs

    # Cost estimate reflects the padded work actually performed.
    flops = 2 * Bp * sum(padded[i] * padded[i + 1] for i in range(len(padded) - 1))
    weight_bytes = sum(int(a.size) * a.dtype.itemsize for a in flat)
    bytes_accessed = weight_bytes + Bp * (in_p + out_p) * 4
    cost = pl.CostEstimate(flops=flops,
                           transcendentals=2 * Bp * out_p,
                           bytes_accessed=bytes_accessed)

    out_padded = pl.pallas_call(
        mlp_kernel,
        out_shape=jax.ShapeDtypeStruct((Bp, out_p), jnp.float32),
        grid=grid,
        in_specs=in_specs,
        out_specs=out_spec,
        compiler_params=pltpu.CompilerParams(
            dimension_semantics=("parallel",)),
        cost_estimate=cost,
    )(x, *flat)

    return out_padded[:B, :out_c]


def init_params(key, input_channel, output_channel):
    dims = [input_channel] + list(_HIDDEN) + [output_channel]
    params = []
    for i in range(len(dims) - 1):
        fan_in, fan_out = dims[i], dims[i + 1]
        key, kw, kb = jax.random.split(key, 3)
        bound = 1.0 / jnp.sqrt(fan_in)
        # Stored as (in, out) — transposed relative to PyTorch's (out, in).
        w = jax.random.uniform(kw, (fan_in, fan_out), jnp.float32, -bound, bound)
        b = jax.random.uniform(kb, (fan_out,), jnp.float32, -bound, bound)
        params.append((w, b))
    return params


def reference_forward(x, params):
    # Same numerics as the kernel: bf16 matmul operands, f32 accumulation/elementwise.
    h = x
    n = len(params)
    for i, (w, b) in enumerate(params):
        h = jnp.dot(h.astype(jnp.bfloat16), w.astype(jnp.bfloat16),
                    preferred_element_type=jnp.float32) + b
        if i < n - 1:
            h = jnp.maximum(h, 0.0)
        else:
            h = _softplus(h)
    return h


if __name__ == "__main__":
    key = jax.random.PRNGKey(0)
    input_channel = 32
    output_channel = 16
    batch = 8

    key, kx = jax.random.split(key)
    x = jax.random.normal(kx, (batch, input_channel), jnp.float32)
    params = init_params(key, input_channel, output_channel)

    out = msci_model_forward(x, params)
    out = jax.block_until_ready(out)

    ref = reference_forward(x, params)
    assert out.shape == (batch, output_channel)
    assert jnp.allclose(out, ref, atol=5e-3, rtol=5e-3), "mismatch vs reference"

    print("KERNEL_OK")
</pallas_src>

<mosaic_0001>
module attributes {stable_mosaic.version = 11 : i64} {
  func.func @mlp_kernel(%arg0: i32, %arg1: memref<8x32xf32, #tpu.memory_space<vmem>>, %arg2: memref<32x384xbf16, #tpu.memory_space<vmem>>, %arg3: memref<1x384xf32, #tpu.memory_space<vmem>>, %arg4: memref<384x384xbf16, #tpu.memory_space<vmem>>, %arg5: memref<1x384xf32, #tpu.memory_space<vmem>>, %arg6: memref<384x640xbf16, #tpu.memory_space<vmem>>, %arg7: memref<1x640xf32, #tpu.memory_space<vmem>>, %arg8: memref<640x512xbf16, #tpu.memory_space<vmem>>, %arg9: memref<1x512xf32, #tpu.memory_space<vmem>>, %arg10: memref<512x128xbf16, #tpu.memory_space<vmem>>, %arg11: memref<1x128xf32, #tpu.memory_space<vmem>>, %arg12: memref<8x128xf32, #tpu.memory_space<vmem>>) attributes {dimension_semantics = [#tpu.dimension_semantics<parallel>], iteration_bounds = array<i64: 1>, scalar_prefetch = 0 : i64, scratch_operands = 0 : i64, tpu.core_type = #tpu.core_type<tc>, window_params = [{transform_indices = @transform_0, window_bounds = array<i64: 8, 32>}, {pipeline_mode = #tpu.pipeline_mode<synchronous>, transform_indices = @transform_1, window_bounds = array<i64: 32, 384>}, {pipeline_mode = #tpu.pipeline_mode<synchronous>, transform_indices = @transform_2, window_bounds = array<i64: 1, 384>}, {pipeline_mode = #tpu.pipeline_mode<synchronous>, transform_indices = @transform_3, window_bounds = array<i64: 384, 384>}, {pipeline_mode = #tpu.pipeline_mode<synchronous>, transform_indices = @transform_4, window_bounds = array<i64: 1, 384>}, {pipeline_mode = #tpu.pipeline_mode<synchronous>, transform_indices = @transform_5, window_bounds = array<i64: 384, 640>}, {pipeline_mode = #tpu.pipeline_mode<synchronous>, transform_indices = @transform_6, window_bounds = array<i64: 1, 640>}, {pipeline_mode = #tpu.pipeline_mode<synchronous>, transform_indices = @transform_7, window_bounds = array<i64: 640, 512>}, {pipeline_mode = #tpu.pipeline_mode<synchronous>, transform_indices = @transform_8, window_bounds = array<i64: 1, 512>}, {pipeline_mode = #tpu.pipeline_mode<synchronous>, transform_indices = @transform_9, window_bounds = array<i64: 512, 128>}, {pipeline_mode = #tpu.pipeline_mode<synchronous>, transform_indices = @transform_10, window_bounds = array<i64: 1, 128>}, {transform_indices = @transform_11, window_bounds = array<i64: 8, 128>}]} {
    %c0 = arith.constant 0 : index
    %c0_0 = arith.constant 0 : index
    %0 = vector.load %arg1[%c0, %c0_0] : memref<8x32xf32, #tpu.memory_space<vmem>>, vector<8x32xf32>
    %1 = arith.truncf %0 : vector<8x32xf32> to vector<8x32xbf16>
    %c0_1 = arith.constant 0 : index
    %c0_2 = arith.constant 0 : index
    %2 = vector.load %arg2[%c0_1, %c0_2] : memref<32x384xbf16, #tpu.memory_space<vmem>>, vector<32x384xbf16>
    %cst = arith.constant dense<0.000000e+00> : vector<8x384xf32>
    %3 = tpu.matmul %1, %2, %cst {dimension_numbers = #tpu.dot_dimension_numbers<[1], [0], [0], [1], [0, 0, 1, 1], [], []>} : vector<8x32xbf16>, vector<32x384xbf16>, vector<8x384xf32> -> vector<8x384xf32>
    %c0_3 = arith.constant 0 : index
    %c0_4 = arith.constant 0 : index
    %4 = vector.load %arg3[%c0_3, %c0_4] : memref<1x384xf32, #tpu.memory_space<vmem>>, vector<1x384xf32>
    %5 = vector.broadcast %4 : vector<1x384xf32> to vector<8x384xf32>
    %6 = arith.addf %3, %5 : vector<8x384xf32>
    %cst_5 = arith.constant 0.000000e+00 : f32
    %7 = vector.broadcast %cst_5 : f32 to vector<8x384xf32>
    %8 = arith.maximumf %6, %7 : vector<8x384xf32>
    %9 = arith.truncf %8 : vector<8x384xf32> to vector<8x384xbf16>
    %c0_6 = arith.constant 0 : index
    %c0_7 = arith.constant 0 : index
    %10 = vector.load %arg4[%c0_6, %c0_7] : memref<384x384xbf16, #tpu.memory_space<vmem>>, vector<384x384xbf16>
    %cst_8 = arith.constant dense<0.000000e+00> : vector<8x384xf32>
    %11 = tpu.matmul %9, %10, %cst_8 {dimension_numbers = #tpu.dot_dimension_numbers<[1], [0], [0], [1], [0, 0, 1, 1], [], []>} : vector<8x384xbf16>, vector<384x384xbf16>, vector<8x384xf32> -> vector<8x384xf32>
    %c0_9 = arith.constant 0 : index
    %c0_10 = arith.constant 0 : index
    %12 = vector.load %arg5[%c0_9, %c0_10] : memref<1x384xf32, #tpu.memory_space<vmem>>, vector<1x384xf32>
    %13 = vector.broadcast %12 : vector<1x384xf32> to vector<8x384xf32>
    %14 = arith.addf %11, %13 : vector<8x384xf32>
    %cst_11 = arith.constant 0.000000e+00 : f32
    %15 = vector.broadcast %cst_11 : f32 to vector<8x384xf32>
    %16 = arith.maximumf %14, %15 : vector<8x384xf32>
    %17 = arith.truncf %16 : vector<8x384xf32> to vector<8x384xbf16>
    %c0_12 = arith.constant 0 : index
    %c0_13 = arith.constant 0 : index
    %18 = vector.load %arg6[%c0_12, %c0_13] : memref<384x640xbf16, #tpu.memory_space<vmem>>, vector<384x640xbf16>
    %cst_14 = arith.constant dense<0.000000e+00> : vector<8x640xf32>
    %19 = tpu.matmul %17, %18, %cst_14 {dimension_numbers = #tpu.dot_dimension_numbers<[1], [0], [0], [1], [0, 0, 1, 1], [], []>} : vector<8x384xbf16>, vector<384x640xbf16>, vector<8x640xf32> -> vector<8x640xf32>
    %c0_15 = arith.constant 0 : index
    %c0_16 = arith.constant 0 : index
    %20 = vector.load %arg7[%c0_15, %c0_16] : memref<1x640xf32, #tpu.memory_space<vmem>>, vector<1x640xf32>
    %21 = vector.broadcast %20 : vector<1x640xf32> to vector<8x640xf32>
    %22 = arith.addf %19, %21 : vector<8x640xf32>
    %cst_17 = arith.constant 0.000000e+00 : f32
    %23 = vector.broadcast %cst_17 : f32 to vector<8x640xf32>
    %24 = arith.maximumf %22, %23 : vector<8x640xf32>
    %25 = arith.truncf %24 : vector<8x640xf32> to vector<8x640xbf16>
    %c0_18 = arith.constant 0 : index
    %c0_19 = arith.constant 0 : index
    %26 = vector.load %arg8[%c0_18, %c0_19] : memref<640x512xbf16, #tpu.memory_space<vmem>>, vector<640x512xbf16>
    %cst_20 = arith.constant dense<0.000000e+00> : vector<8x512xf32>
    %27 = tpu.matmul %25, %26, %cst_20 {dimension_numbers = #tpu.dot_dimension_numbers<[1], [0], [0], [1], [0, 0, 1, 1], [], []>} : vector<8x640xbf16>, vector<640x512xbf16>, vector<8x512xf32> -> vector<8x512xf32>
    %c0_21 = arith.constant 0 : index
    %c0_22 = arith.constant 0 : index
    %28 = vector.load %arg9[%c0_21, %c0_22] : memref<1x512xf32, #tpu.memory_space<vmem>>, vector<1x512xf32>
    %29 = vector.broadcast %28 : vector<1x512xf32> to vector<8x512xf32>
    %30 = arith.addf %27, %29 : vector<8x512xf32>
    %cst_23 = arith.constant 0.000000e+00 : f32
    %31 = vector.broadcast %cst_23 : f32 to vector<8x512xf32>
    %32 = arith.maximumf %30, %31 : vector<8x512xf32>
    %33 = arith.truncf %32 : vector<8x512xf32> to vector<8x512xbf16>
    %c0_24 = arith.constant 0 : index
    %c0_25 = arith.constant 0 : index
    %34 = vector.load %arg10[%c0_24, %c0_25] : memref<512x128xbf16, #tpu.memory_space<vmem>>, vector<512x128xbf16>
    %cst_26 = arith.constant dense<0.000000e+00> : vector<8x128xf32>
    %35 = tpu.matmul %33, %34, %cst_26 {dimension_numbers = #tpu.dot_dimension_numbers<[1], [0], [0], [1], [0, 0, 1, 1], [], []>} : vector<8x512xbf16>, vector<512x128xbf16>, vector<8x128xf32> -> vector<8x128xf32>
    %c0_27 = arith.constant 0 : index
    %c0_28 = arith.constant 0 : index
    %36 = vector.load %arg11[%c0_27, %c0_28] : memref<1x128xf32, #tpu.memory_space<vmem>>, vector<1x128xf32>
    %37 = vector.broadcast %36 : vector<1x128xf32> to vector<8x128xf32>
    %38 = arith.addf %35, %37 : vector<8x128xf32>
    %cst_29 = arith.constant 2.000000e+01 : f32
    %39 = vector.broadcast %cst_29 : f32 to vector<8x128xf32>
    %40 = arith.cmpf ogt, %38, %39 : vector<8x128xf32>
    %cst_30 = arith.constant 2.000000e+01 : f32
    %41 = vector.broadcast %cst_30 : f32 to vector<8x128xf32>
    %42 = arith.minimumf %38, %41 : vector<8x128xf32>
    %43 = math.exp %42 : vector<8x128xf32>
    %44 = math.log1p %43 : vector<8x128xf32>
    %45 = arith.select %40, %38, %44 : vector<8x128xi1>, vector<8x128xf32>
    %c0_31 = arith.constant 0 : index
    %c0_32 = arith.constant 0 : index
    %46 = vector.load %arg12[%c0_31, %c0_32] : memref<8x128xf32, #tpu.memory_space<vmem>>, vector<8x128xf32>
    tpu.vector_store %arg12[%c0_31, %c0_32], %45 {strides = array<i32>} : memref<8x128xf32, #tpu.memory_space<vmem>>, vector<8x128xf32>,
    return
  }
  func.func @transform_0(%arg0: i32) -> (i32, i32) {
    %c0_i32 = arith.constant 0 : i32
    %c0_i32_0 = arith.constant 0 : i32
    return %arg0, %c0_i32 : i32, i32
  }
  func.func @transform_1(%arg0: i32) -> (i32, i32) {
    %c0_i32 = arith.constant 0 : i32
    %c0_i32_0 = arith.constant 0 : i32
    %c0_i32_1 = arith.constant 0 : i32
    return %c0_i32, %c0_i32_0 : i32, i32
  }
  func.func @transform_2(%arg0: i32) -> (i32, i32) {
    %c0_i32 = arith.constant 0 : i32
    %c0_i32_0 = arith.constant 0 : i32
    %c0_i32_1 = arith.constant 0 : i32
    return %c0_i32, %c0_i32_0 : i32, i32
  }
  func.func @transform_3(%arg0: i32) -> (i32, i32) {
    %c0_i32 = arith.constant 0 : i32
    %c0_i32_0 = arith.constant 0 : i32
    %c0_i32_1 = arith.constant 0 : i32
    return %c0_i32, %c0_i32_0 : i32, i32
  }
  func.func @transform_4(%arg0: i32) -> (i32, i32) {
    %c0_i32 = arith.constant 0 : i32
    %c0_i32_0 = arith.constant 0 : i32
    %c0_i32_1 = arith.constant 0 : i32
    return %c0_i32, %c0_i32_0 : i32, i32
  }
  func.func @transform_5(%arg0: i32) -> (i32, i32) {
    %c0_i32 = arith.constant 0 : i32
    %c0_i32_0 = arith.constant 0 : i32
    %c0_i32_1 = arith.constant 0 : i32
    return %c0_i32, %c0_i32_0 : i32, i32
  }
  func.func @transform_6(%arg0: i32) -> (i32, i32) {
    %c0_i32 = arith.constant 0 : i32
    %c0_i32_0 = arith.constant 0 : i32
    %c0_i32_1 = arith.constant 0 : i32
    return %c0_i32, %c0_i32_0 : i32, i32
  }
  func.func @transform_7(%arg0: i32) -> (i32, i32) {
    %c0_i32 = arith.constant 0 : i32
    %c0_i32_0 = arith.constant 0 : i32
    %c0_i32_1 = arith.constant 0 : i32
    return %c0_i32, %c0_i32_0 : i32, i32
  }
  func.func @transform_8(%arg0: i32) -> (i32, i32) {
    %c0_i32 = arith.constant 0 : i32
    %c0_i32_0 = arith.constant 0 : i32
    %c0_i32_1 = arith.constant 0 : i32
    return %c0_i32, %c0_i32_0 : i32, i32
  }
  func.func @transform_9(%arg0: i32) -> (i32, i32) {
    %c0_i32 = arith.constant 0 : i32
    %c0_i32_0 = arith.constant 0 : i32
    %c0_i32_1 = arith.constant 0 : i32
    return %c0_i32, %c0_i32_0 : i32, i32
  }
  func.func @transform_10(%arg0: i32) -> (i32, i32) {
    %c0_i32 = arith.constant 0 : i32
    %c0_i32_0 = arith.constant 0 : i32
    %c0_i32_1 = arith.constant 0 : i32
    return %c0_i32, %c0_i32_0 : i32, i32
  }
  func.func @transform_11(%arg0: i32) -> (i32, i32) {
    %c0_i32 = arith.constant 0 : i32
    %c0_i32_0 = arith.constant 0 : i32
    return %arg0, %c0_i32 : i32, i32
  }
}

</mosaic_0001>

<bundles_post_ra>
// kernel: tpu_custom_call.1
= control target key start
LH: loop header
LB: loop body
LE: loop exit
PB: predicated region body
PF: predicated region fallthrough
CT: control target
= control target key end

     0   :  { %16 = vsyncpa [#allocation3], 0  ;;  %s5140_s0 = inlined_call_operand.hbm [shape: f32[8,32], index: 0, kind: input, shape index: {}]   ;;  %s5141_s1 = inlined_call_operand.hbm [shape: bf16[32,384], index: 1, kind: input, shape index: {}]   ;;  %s5142_s2 = inlined_call_operand.hbm [shape: f32[1,384], index: 2, kind: input, shape index: {}]   ;;  %s5143_s3 = inlined_call_operand.hbm [shape: bf16[384,384], index: 3, kind: input, shape index: {}]   ;;  %s5144_s4 = inlined_call_operand.hbm [shape: f32[1,384], index: 4, kind: input, shape index: {}]   ;;  %s5145_s5 = inlined_call_operand.hbm [shape: bf16[384,640], index: 5, kind: input, shape index: {}]   ;;  %s5146_s6 = inlined_call_operand.vmem [shape: f32[1,640], index: 6, kind: input, shape index: {}]   ;;  %s5147_s7 = inlined_call_operand.hbm [shape: bf16[640,512], index: 7, kind: input, shape index: {}]   ;;  %s5148_s8 = inlined_call_operand.vmem [shape: f32[1,512], index: 8, kind: input, shape index: {}]   ;;  %s5149_s9 = inlined_call_operand.hbm [shape: bf16[512,128], index: 9, kind: input, shape index: {}]   ;;  %s5150_s10 = inlined_call_operand.vmem [shape: f32[1,128], index: 10, kind: input, shape index: {}]   ;;  %s5151_s11 = inlined_call_operand.hbm [shape: f32[8,128], index: 11, kind: output, shape index: {}]  }
   0x1   :  { %17 = vsyncpa [#allocation6], 0 }
   0x2   :  { %18 = vsyncpa [#allocation9], 0 }
   0x3   :  { %19 = vsyncpa [#allocation12], 0 }
   0x4   :  { %20 = vsyncpa [#allocation15], 0 }
   0x5   :  { %21 = vsyncpa [#allocation4], 0  ;;  %s4930_s17 = smov [#allocation5]  }
   0x6   :  { %s37_s18 = sshll.u32 %s4930_s17, 4  ;;  %s38_s18 = int_to_ptr.vmem [resolvable:$true] %s37_s18 }
   0x7   :  { %s4746_s19 = scalar_lea.vmem %s38_s18, 768  ;;  %p4751_p1 = scmp.lt.s32.totalorder %s38_s18, %s38_s18 }
   0x8   :  { %p4747_p0 = scmp.ne.s32.totalorder %s38_s18, %s4746_s19  ;;  %p4752_p2 = scmp.lt.s32.totalorder %s4746_s19, %s4746_s19 }
   0xa   :  { %p4753_p3 = por %p4752_p2, %p4751_p1 }
   0xc   :  { %p4754_p4 = pnand %p4753_p3, %p4747_p0 }
   0xe   :  { %4757 = shalt.err (!%p4754_p4)
}
   0xf   :  { %s4931_s20 = smov 192   ;;  %s4932_s21 = smov 12  }
  0x10   :  { %43 = dma.hbm_to_vmem [thread:$0]  %s5141_s1, 768, %s38_s18, [#allocation6], %s4931_s20, %s4931_s20, %s4932_s21  }
  0x11   :  { %s4933_s24 = smov [#allocation8]   ;;  %s4934_s26 = smov [#allocation11]  }
  0x12   :  { %s59_s25 = sshll.u32 %s4933_s24, 4  ;;  %s81_s27 = sshll.u32 %s4934_s26, 4  ;;  %s60_s25 = int_to_ptr.vmem [resolvable:$true] %s59_s25  ;;  %s82_s27 = int_to_ptr.vmem [resolvable:$true] %s81_s27 }
  0x13   :  { %s4766_s28 = scalar_lea.vmem %s60_s25, 9216  ;;  %p4771_p6 = scmp.lt.s32.totalorder %s60_s25, %s60_s25 }
  0x14   :  { %p4767_p5 = scmp.ne.s32.totalorder %s60_s25, %s4766_s28  ;;  %p4772_p7 = scmp.lt.s32.totalorder %s4766_s28, %s4766_s28 }
  0x16   :  { %p4773_p8 = por %p4772_p7, %p4771_p6 }
  0x18   :  { %p4774_p9 = pnand %p4773_p8, %p4767_p5 }
  0x1a   :  { %4777 = shalt.err (!%p4774_p9)
}
  0x1b   :  { %65 = dma.hbm_to_vmem [thread:$0]  %s5143_s3, 9216, %s60_s25, [#allocation9], %s4931_s20, %s4931_s20, %s4932_s21  }
  0x1c   :  { %s4786_s12 = scalar_lea.vmem %s82_s27, 15360  ;;  %p4791_p11 = scmp.lt.s32.totalorder %s82_s27, %s82_s27 }
  0x1d   :  { %p4787_p10 = scmp.ne.s32.totalorder %s82_s27, %s4786_s12  ;;  %p4792_p12 = scmp.lt.s32.totalorder %s4786_s12, %s4786_s12 }
  0x1f   :  { %p4793_p13 = por %p4792_p12, %p4791_p11 }
  0x21   :  { %p4794_p0 = pnand %p4793_p13, %p4787_p10 }
  0x23   :  { %4797 = shalt.err (!%p4794_p0)
}
  0x24   :  { %s4935_s1 = smov 320   ;;  %s4936_s13 = smov 20  }
  0x25   :  { %87 = dma.hbm_to_vmem [thread:$0]  %s5145_s5, 15360, %s82_s27, [#allocation12], %s4935_s1, %s4935_s1, %s4936_s13  }
  0x26   :  { %s4937_s16 = smov [#allocation2]   ;;  %s4938_s18 = smov [#allocation7]  }
  0x27   :  { %s28_s17 = sshll.u32 %s4937_s16, 4  ;;  %s50_s19 = sshll.u32 %s4938_s18, 4  ;;  %s29_s17 = int_to_ptr.vmem [resolvable:$true] %s28_s17  ;;  %s51_s19 = int_to_ptr.vmem [resolvable:$true] %s50_s19 }
  0x28   :  { %s4806_s3 = scalar_lea.vmem %s29_s17, 128  ;;  %p4811_p2 = scmp.lt.s32.totalorder %s29_s17, %s29_s17 }
  0x29   :  { %p4807_p1 = scmp.ne.s32.totalorder %s29_s17, %s4806_s3  ;;  %p4812_p3 = scmp.lt.s32.totalorder %s4806_s3, %s4806_s3 }
  0x2b   :  { %p4813_p4 = por %p4812_p3, %p4811_p2 }
  0x2d   :  { %p4814_p5 = pnand %p4813_p4, %p4807_p1 }
  0x2f   :  { %4817 = shalt.err (!%p4814_p5)
}
  0x30   :  { %31 = dma.hbm_to_vmem [thread:$0]  %s5140_s0, 128, %s29_s17, [#allocation3]  }
  0x31   :  { %s4826_s22 = scalar_lea.vmem %s51_s19, 48  ;;  %s4830_s5 = scalar_lea.vmem %s51_s19, 64 }
  0x32   :  { %p4827_p6 = scmp.ne.s32.totalorder %s51_s19, %s4826_s22  ;;  %p4831_p7 = scmp.lt.s32.totalorder %s51_s19, %s51_s19 }
  0x33   :  { %p4832_p8 = scmp.lt.s32.totalorder %s4830_s5, %s4826_s22 }
  0x35   :  { %p4833_p9 = por %p4832_p8, %p4831_p7 }
  0x37   :  { %p4834_p10 = pnand %p4833_p9, %p4827_p6 }
  0x39   :  { %4837 = shalt.err (!%p4834_p10)
}
  0x3a   :  { %53 = dma.hbm_to_vmem [thread:$0]  %s5142_s2, 48, %s51_s19, [#allocation6]  }
  0x3b   :  { %s4939_s25 = smov [#allocation10]   ;;  %s4940_s27 = smov [#allocation13]  }
  0x3c   :  { %s72_s26 = sshll.u32 %s4939_s25, 4  ;;  %s95_s28 = sshll.u32 %s4940_s27, 4  ;;  %s73_s26 = int_to_ptr.vmem [resolvable:$true] %s72_s26  ;;  %s96_s28 = int_to_ptr.vmem [resolvable:$true] %s95_s28 }
  0x3d   :  { %s4846_s29 = scalar_lea.vmem %s73_s26, 48  ;;  %s4850_s0 = scalar_lea.vmem %s73_s26, 64 }
  0x3e   :  { %p4847_p11 = scmp.ne.s32.totalorder %s73_s26, %s4846_s29  ;;  %p4851_p12 = scmp.lt.s32.totalorder %s73_s26, %s73_s26 }
  0x3f   :  { %p4852_p13 = scmp.lt.s32.totalorder %s4850_s0, %s4846_s29 }
  0x41   :  { %p4853_p0 = por %p4852_p13, %p4851_p12 }
  0x43   :  { %p4854_p1 = pnand %p4853_p0, %p4847_p11 }
  0x45   :  { %4857 = shalt.err (!%p4854_p1)
}
  0x46   :  { %75 = dma.hbm_to_vmem [thread:$0]  %s5144_s4, 48, %s73_s26, [#allocation9]  }
  0x47   :  { %s4866_s1 = scalar_lea.vmem %s96_s28, 20480  ;;  %p4871_p3 = scmp.lt.s32.totalorder %s96_s28, %s96_s28 }
  0x48   :  { %p4867_p2 = scmp.ne.s32.totalorder %s96_s28, %s4866_s1  ;;  %p4872_p4 = scmp.lt.s32.totalorder %s4866_s1, %s4866_s1 }
  0x4a   :  { %p4873_p5 = por %p4872_p4, %p4871_p3 }
  0x4c   :  { %p4874_p6 = pnand %p4873_p5, %p4867_p2 }
  0x4e   :  { %4877 = shalt.err (!%p4874_p6)
}
  0x4f   :  { %s4941_s2 = smov 256   ;;  %s4942_s13 = smov 16  }
  0x50   :  { %101 = dma.hbm_to_vmem [thread:$0]  %s5147_s7, 20480, %s96_s28, [#allocation12], %s4941_s2, %s4941_s2, %s4942_s13  }
  0x51   :  { %s4943_s16 = smov [#allocation14]  }
  0x52   :  { %s109_s17 = sshll.u32 %s4943_s16, 4  ;;  %s110_s17 = int_to_ptr.vmem [resolvable:$true] %s109_s17 }
  0x53   :  { %s4886_s18 = scalar_lea.vmem %s110_s17, 4096  ;;  %p4891_p8 = scmp.lt.s32.totalorder %s110_s17, %s110_s17 }
  0x54   :  { %p4887_p7 = scmp.ne.s32.totalorder %s110_s17, %s4886_s18  ;;  %p4892_p9 = scmp.lt.s32.totalorder %s4886_s18, %s4886_s18 }
  0x56   :  { %p4893_p10 = por %p4892_p9, %p4891_p8 }
  0x58   :  { %p4894_p11 = pnand %p4893_p10, %p4887_p7 }
  0x5a   :  { %4897 = shalt.err (!%p4894_p11)
}
  0x5b   :  { %s4944_s4 = smov 64   ;;  %s4945_s19 = smov 4  }
  0x5c   :  { %115 = dma.hbm_to_vmem [thread:$0]  %s5149_s9, 4096, %s110_s17, [#allocation15], %s4944_s4, %s4944_s4, %s4945_s19  }
  0x5d   :  { %4918 = dma.done.wait [#allocation3], 128  }
  0x5e   :  { %4919 = vsyncadd [#allocation3], 4294967168 }
  0x5f   :  { %4920 = dma.done.wait [#allocation6], 816  }
  0x60   :  { %4921 = vsyncadd [#allocation6], 4294966480 }
  0x61   :  { %4922 = dma.done.wait [#allocation9], 9264  }
  0x62   :  { %4923 = vsyncadd [#allocation9], 4294958032 }
  0x63   :  { %4924 = dma.done.wait [#allocation12], 35840  }
  0x64   :  { %4925 = vsyncadd [#allocation12], 4294931456 }
  0x65   :  { %4926 = dma.done.wait [#allocation15], 4096  }
  0x66   :  { %4927 = vsyncadd [#allocation15], 4294963200  ;;  %v4946_v0 = vmov 0   ;;  %v4190_v1 = vld [vmem:[#allocation5 + $0x1c] ss:$12 sps:$4 sm:$0xff]   ;;  %vm202_vm0 = vcmask 261120   ;;  %v155_v59 = vlaneseq }
  0x67   :  { %238 = vmatprep.mubr.bf16.mxu1 %v4946_v0  ;;  %v4192_v2 = vld [vmem:[#allocation5 + $0x18] ss:$12 sps:$4 sm:$0xff]   ;;  %218 = vmatprep.subr.bf16.mxu1 %v4190_v1  ;;  %v4195_v4 = vld [vmem:[#allocation5] ss:$12 sps:$4 sm:$0xff]   ;;  %v4200_v8 = vld [vmem:[#allocation8 + $0xa8] ss:$12 sps:$4 sm:$0xff]  }
  0x68   :  { %v4193_v3 = vld [vmem:[#allocation5 + $0x4] ss:$12 sps:$4 sm:$0xff]   ;;  %219 = vmatpush1.bf16.msra.mxu1 %v4192_v2  ;;  %v143_v5 = vld [vmem:[#allocation2] sm:$0xff]  ;;  %v4198_v6 = vld [vmem:[#allocation8 + $0xac] ss:$12 sps:$4 sm:$0xff]   ;;  %v4947_v11 = vmov 0.0  }
  0x69   :  { %220 = vmatprep.subr.bf16.mxu1 %v4193_v3  ;;  %v144_v7 = vpack.c.bf16 %v143_v5, %v143_v5  ;;  %v4196_v9 = vld [vmem:[#allocation5 + $0x20] ss:$12 sps:$4 sm:$0xff]   ;;  %790 = vmatprep.subr.bf16.mxu0 %v4198_v6  ;;  %v4201_v10 = vld [vmem:[#allocation8 + $0x94] ss:$12 sps:$4 sm:$0xff]   ;;  %v4203_v12 = vld [vmem:[#allocation8 + $0x90] ss:$12 sps:$4 sm:$0xff]  }
  0x6a   :  { %791 = vmatpush1.bf16.msra.mxu0 %v4200_v8  ;;  %v4204_v13 = vld [vmem:[#allocation8 + $0x7c] ss:$12 sps:$4 sm:$0xff]   ;;  %v4197_v14 = vld [vmem:[#allocation5 + $0x8] ss:$12 sps:$4 sm:$0xff]   ;;  %vm4948_vm1 = vmmov 0   ;;  %v5043_v60 = vshrl.u32 %v155_v59, 7 }
  0x6b   :  { %792 = vmatprep.subr.bf16.mxu0 %v4201_v10  ;;  %v4206_v15 = vld [vmem:[#allocation8 + $0x78] ss:$12 sps:$4 sm:$0xff]   ;;  %v4209_v17 = vld [vmem:[#allocation8 + $0x60] ss:$12 sps:$4 sm:$0xff]   ;;  %v4228_v19 = vld [vmem:[#allocation8 + $0x228] ss:$12 sps:$4 sm:$0xff]  }
  0x6c   :  { %221 = vmatpush1.bf16.msra.mxu1 %v4195_v4  ;;  %v4207_v16 = vld [vmem:[#allocation8 + $0x64] ss:$12 sps:$4 sm:$0xff]   ;;  %v4210_v18 = vld [vmem:[#allocation8 + $0x4c] ss:$12 sps:$4 sm:$0xff]   ;;  %v4212_v21 = vld [vmem:[#allocation8 + $0x48] ss:$12 sps:$4 sm:$0xff]  }
  0x6d   :  { %4122 = vmatprep.subr.bf16.mxu1 %v4947_v11  ;;  %v4230_v20 = vld [vmem:[#allocation8 + $0x22c] ss:$12 sps:$4 sm:$0xff]   ;;  %v4213_v22 = vld [vmem:[#allocation8 + $0x34] ss:$12 sps:$4 sm:$0xff]   ;;  %v4234_v23 = vld [vmem:[#allocation8 + $0x210] ss:$12 sps:$4 sm:$0xff]  }
  0x6e   :  { %793 = vmatpush1.bf16.msra.mxu0 %v4203_v12  ;;  %v4236_v24 = vld [vmem:[#allocation8 + $0x214] ss:$12 sps:$4 sm:$0xff]   ;;  %v4215_v25 = vld [vmem:[#allocation8 + $0x30] ss:$12 sps:$4 sm:$0xff]   ;;  %v4240_v28 = vld [vmem:[#allocation8 + $0x1f8] ss:$12 sps:$4 sm:$0xff]  }
  0x6f   :  { %3626 = vmatmul.mubr.msk.bf16.vlgmr.msra.gmra.mxu1 %vm202_vm0, %v144_v7  ;;  %794 = vmatprep.subr.bf16.mxu0 %v4204_v13  ;;  %v4242_v26 = vld [vmem:[#allocation8 + $0x1fc] ss:$12 sps:$4 sm:$0xff]   ;;  %v4248_v29 = vld [vmem:[#allocation8 + $0x1e4] ss:$12 sps:$4 sm:$0xff]   ;;  %v4221_v32 = vld [vmem:[#allocation8] ss:$12 sps:$4 sm:$0xff]  }
  0x70   :  { %4123 = vmatpush3.bf16.msra.mxu1 %v4196_v9  ;;  %4126 = vmatprep.mubr.msk.bf16.mxu1 %vm4948_vm1, %v4947_v11  ;;  %v4216_v27 = vld [vmem:[#allocation8 + $0x1c] ss:$12 sps:$4 sm:$0xff]   ;;  %v4218_v30 = vld [vmem:[#allocation8 + $0x18] ss:$12 sps:$4 sm:$0xff]   ;;  %v4246_v33 = vld [vmem:[#allocation8 + $0x1e0] ss:$12 sps:$4 sm:$0xff]  }
  0x71   :  { %4124 = vmatprep.subr.bf16.mxu1 %v4947_v11  ;;  %v4219_v31 = vld [vmem:[#allocation8 + $0x4] ss:$12 sps:$4 sm:$0xff]   ;;  %v4254_v34 = vld [vmem:[#allocation8 + $0x1cc] ss:$12 sps:$4 sm:$0xff]   ;;  %v4252_v36 = vld [vmem:[#allocation8 + $0x1c8] ss:$12 sps:$4 sm:$0xff]  }
  0x72   :  { %795 = vmatpush1.bf16.msra.mxu0 %v4206_v15  ;;  %v4222_v35 = vld [vmem:[#allocation8 + $0x16c] ss:$12 sps:$4 sm:$0xff]   ;;  %v4224_v37 = vld [vmem:[#allocation8 + $0x168] ss:$12 sps:$4 sm:$0xff]   ;;  %v4227_v39 = vld [vmem:[#allocation8 + $0x150] ss:$12 sps:$4 sm:$0xff]  }
  0x73   :  { %796 = vmatprep.subr.bf16.mxu0 %v4207_v16  ;;  %v4225_v38 = vld [vmem:[#allocation8 + $0x154] ss:$12 sps:$4 sm:$0xff]   ;;  %v4231_v40 = vld [vmem:[#allocation8 + $0x13c] ss:$12 sps:$4 sm:$0xff]   ;;  %v4233_v41 = vld [vmem:[#allocation8 + $0x138] ss:$12 sps:$4 sm:$0xff]  }
  0x74   :  { %4125 = vmatpush3.bf16.msra.mxu1 %v4197_v14  ;;  %v4237_v42 = vld [vmem:[#allocation8 + $0x124] ss:$12 sps:$4 sm:$0xff]   ;;  %v4239_v43 = vld [vmem:[#allocation8 + $0x120] ss:$12 sps:$4 sm:$0xff]   ;;  %v4245_v45 = vld [vmem:[#allocation8 + $0x108] ss:$12 sps:$4 sm:$0xff]  }
  0x75   :  { %831 = vmatprep.subr.bf16.mxu1 %v4230_v20  ;;  %v4243_v44 = vld [vmem:[#allocation8 + $0x10c] ss:$12 sps:$4 sm:$0xff]   ;;  %v4249_v46 = vld [vmem:[#allocation8 + $0xf4] ss:$12 sps:$4 sm:$0xff]   ;;  %v4251_v47 = vld [vmem:[#allocation8 + $0xf0] ss:$12 sps:$4 sm:$0xff]  }
  0x76   :  { %797 = vmatpush1.bf16.msra.mxu0 %v4209_v17  ;;  %v4255_v48 = vld [vmem:[#allocation8 + $0xdc] ss:$12 sps:$4 sm:$0xff]   ;;  %v4257_v49 = vld [vmem:[#allocation8 + $0xd8] ss:$12 sps:$4 sm:$0xff]   ;;  %v4260_v50 = vld [vmem:[#allocation8 + $0x1b4] ss:$12 sps:$4 sm:$0xff]  }
  0x77   :  { %4127 = vmatmul.mubr.msk.bf16.vlgmr.msra.gmra.mxu1 %vm202_vm0, %v144_v7  ;;  %798 = vmatprep.subr.bf16.mxu0 %v4210_v18  ;;  %v4258_v51 = vld [vmem:[#allocation8 + $0x1b0] ss:$12 sps:$4 sm:$0xff]   ;;  %v4263_v53 = vld [vmem:[#allocation8 + $0xc0] ss:$12 sps:$4 sm:$0xff]   ;;  %v4264_v55 = vld [vmem:[#allocation8 + $0x198] ss:$12 sps:$4 sm:$0xff]  }
  0x78   :  { %863 = vmatprep.mubr.bf16.mxu1 %v4946_v0  ;;  %832 = vmatpush1.bf16.msra.mxu1 %v4228_v19  ;;  %v4261_v52 = vld [vmem:[#allocation8 + $0xc4] ss:$12 sps:$4 sm:$0xff]   ;;  %v4266_v54 = vld [vmem:[#allocation8 + $0x19c] ss:$12 sps:$4 sm:$0xff]   ;;  %v4267_v57 = vld [vmem:[#allocation8 + $0x180] ss:$12 sps:$4 sm:$0xff]  }
  0x79   :  { %833 = vmatprep.subr.bf16.mxu1 %v4236_v24  ;;  %v4269_v56 = vld [vmem:[#allocation8 + $0x184] ss:$12 sps:$4 sm:$0xff]   ;;  %v5046_v61 = vsub.s32 0, %v5043_v60  ;;  %v153_v62 = vld [vmem:[#allocation7] sm:$0x7]  ;;  %v5049_v63 = vsub.s32 1, %v5043_v60 }
  0x7a   :  { %799 = vmatpush1.bf16.msra.mxu0 %v4212_v21  ;;  %v4271_v58 = vld [vmem:[#allocation8 + $0x170] ss:$12 sps:$4 sm:$0xff]   ;;  %v5054_v5 = vsub.s32 2, %v5043_v60  ;;  %v4272_v21 = vld [vmem:[#allocation8 + $0x218] ss:$12 sps:$4 sm:$0xff]   ;;  %s4949_s5 = smov [#allocation16]  }
  0x7b   :  { %800 = vmatprep.subr.bf16.mxu0 %v4213_v22  ;;  %v158_v1 = vrot.slane %v153_v62, %v5046_v61  ;;  %v162_v2 = vrot.slane %v153_v62, %v5049_v63  ;;  %v4270_v15 = vld [vmem:[#allocation8 + $0x230] ss:$12 sps:$4 sm:$0xff]   ;;  %v4312_v59 = vld [vmem:[#allocation11 + $0x28] ss:$20 sps:$4 sm:$0xff]   ;;  %s3607_s23 = sshll.u32 %s4949_s5, 4  ;;  %s3608_s23 = int_to_ptr.vmem [resolvable:$true] %s3607_s23 }
  0x7c   :  { %834 = vmatpush1.bf16.msra.mxu1 %v4234_v23  ;;  %v166_v12 = vrot.slane %v153_v62, %v5054_v5  ;;  %v4273_v23 = vld [vmem:[#allocation8 + $0xb0] ss:$12 sps:$4 sm:$0xff]   ;;  %p4903_p13 = scmp.lt.s32.totalorder %s3608_s23, %s3608_s23 }
  0x7d   :  { %835 = vmatprep.subr.bf16.mxu1 %v4242_v26  ;;  %v4317_v62 = vld [vmem:[#allocation11 + $0x4] ss:$20 sps:$4 sm:$0xff]  }
  0x7e   :  { %801 = vmatpush1.bf16.msra.mxu0 %v4215_v25  ;;  %v4274_v25 = vld [vmem:[#allocation8 + $0x158] ss:$12 sps:$4 sm:$0xff]  }
  0x7f   :  { %802 = vmatprep.subr.bf16.mxu0 %v4216_v27  ;;  %v4275_v27 = vld [vmem:[#allocation8 + $0x200] ss:$12 sps:$4 sm:$0xff]  }
  0x80   :  { %836 = vmatpush1.bf16.msra.mxu1 %v4240_v28  ;;  %v4276_v28 = vld [vmem:[#allocation8 + $0x98] ss:$12 sps:$4 sm:$0xff]  }
  0x81   :  { %837 = vmatprep.subr.bf16.mxu1 %v4248_v29  ;;  %v4277_v29 = vld [vmem:[#allocation8 + $0x140] ss:$12 sps:$4 sm:$0xff]  }
  0x82   :  { %803 = vmatpush1.bf16.msra.mxu0 %v4218_v30  ;;  %v4278_v30 = vld [vmem:[#allocation8 + $0x1e8] ss:$12 sps:$4 sm:$0xff]  }
  0x83   :  { %804 = vmatprep.subr.bf16.mxu0 %v4219_v31  ;;  %v4279_v31 = vld [vmem:[#allocation8 + $0x80] ss:$12 sps:$4 sm:$0xff]  }
  0x84   :  { %838 = vmatpush1.bf16.msra.mxu1 %v4246_v33  ;;  %v4281_v33 = vld [vmem:[#allocation8 + $0x1d0] ss:$12 sps:$4 sm:$0xff]  }
  0x85   :  { %839 = vmatprep.subr.bf16.mxu1 %v4254_v34  ;;  %v4282_v34 = vld [vmem:[#allocation8 + $0x68] ss:$12 sps:$4 sm:$0xff]  }
  0x86   :  { %805 = vmatpush1.bf16.msra.mxu0 %v4221_v32  ;;  %v4280_v32 = vld [vmem:[#allocation8 + $0x128] ss:$12 sps:$4 sm:$0xff]  }
  0x87   :  { %806 = vmatprep.subr.bf16.mxu0 %v4222_v35  ;;  %v4283_v35 = vld [vmem:[#allocation8 + $0x110] ss:$12 sps:$4 sm:$0xff]  }
  0x88   :  { %840 = vmatpush1.bf16.msra.mxu1 %v4252_v36  ;;  %v4284_v36 = vld [vmem:[#allocation8 + $0x1b8] ss:$12 sps:$4 sm:$0xff]  }
  0x89   :  { %841 = vmatprep.subr.bf16.mxu1 %v4260_v50  ;;  %v4302_v50 = vld [vmem:[#allocation11 + $0xcc] ss:$20 sps:$4 sm:$0xff]  }
  0x8a   :  { %807 = vmatpush2.bf16.msra.mxu0 %v4224_v37  ;;  %v4285_v37 = vld [vmem:[#allocation8 + $0x50] ss:$12 sps:$4 sm:$0xff]  }
  0x8b   :  { %808 = vmatprep.subr.bf16.mxu0 %v4225_v38  ;;  %v4286_v38 = vld [vmem:[#allocation8 + $0xf8] ss:$12 sps:$4 sm:$0xff]  }
  0x8c   :  { %842 = vmatpush1.bf16.msra.mxu1 %v4258_v51  ;;  %v4300_v51 = vld [vmem:[#allocation11 + $0xc8] ss:$20 sps:$4 sm:$0xff]  }
  0x8d   :  { %843 = vmatprep.subr.bf16.mxu1 %v4266_v54  ;;  %v4308_v54 = vld [vmem:[#allocation11 + $0x7c] ss:$20 sps:$4 sm:$0xff]  }
  0x8e   :  { %809 = vmatpush2.bf16.msra.mxu0 %v4227_v39  ;;  %v4287_v39 = vld [vmem:[#allocation8 + $0x1a0] ss:$12 sps:$4 sm:$0xff]  }
  0x8f   :  { %810 = vmatprep.subr.bf16.mxu0 %v4231_v40  ;;  %v4288_v40 = vld [vmem:[#allocation8 + $0x38] ss:$12 sps:$4 sm:$0xff]  }
  0x90   :  { %844 = vmatpush1.bf16.msra.mxu1 %v4264_v55  ;;  %v4306_v55 = vld [vmem:[#allocation11 + $0x78] ss:$20 sps:$4 sm:$0xff]  }
  0x91   :  { %845 = vmatprep.subr.bf16.mxu1 %v4269_v56  ;;  %v4311_v56 = vld [vmem:[#allocation11 + $0x54] ss:$20 sps:$4 sm:$0xff]  }
  0x92   :  { %811 = vmatpush2.bf16.msra.mxu0 %v4233_v41  ;;  %v4289_v41 = vld [vmem:[#allocation8 + $0xe0] ss:$12 sps:$4 sm:$0xff]  }
  0x93   :  { %812 = vmatprep.subr.bf16.mxu0 %v4237_v42  ;;  %v4290_v42 = vld [vmem:[#allocation8 + $0x188] ss:$12 sps:$4 sm:$0xff]  }
  0x94   :  { %846 = vmatpush1.bf16.msra.mxu1 %v4267_v57  ;;  %v4309_v57 = vld [vmem:[#allocation11 + $0x50] ss:$20 sps:$4 sm:$0xff]  }
  0x95   :  { %4016 = vmatprep.subr.bf16.mxu1 %v4271_v58  ;;  %v4314_v58 = vld [vmem:[#allocation11 + $0x2c] ss:$20 sps:$4 sm:$0xff]  }
  0x96   :  { %813 = vmatpush2.bf16.msra.mxu0 %v4239_v43  ;;  %v4291_v43 = vld [vmem:[#allocation8 + $0x20] ss:$12 sps:$4 sm:$0xff]  }
  0x97   :  { %814 = vmatprep.subr.bf16.mxu0 %v4243_v44  ;;  %v4292_v44 = vld [vmem:[#allocation8 + $0xc8] ss:$12 sps:$4 sm:$0xff]  }
  0x9a   :  { %815 = vmatpush2.bf16.msra.mxu0 %v4245_v45  ;;  %v4293_v45 = vld [vmem:[#allocation8 + $0x8] ss:$12 sps:$4 sm:$0xff]  }
  0x9b   :  { %816 = vmatprep.subr.bf16.mxu0 %v4249_v46  ;;  %v4296_v46 = vld [vmem:[#allocation11 + $0x11c] ss:$20 sps:$4 sm:$0xff]  }
  0x9e   :  { %817 = vmatpush2.bf16.msra.mxu0 %v4251_v47  ;;  %v4294_v47 = vld [vmem:[#allocation11 + $0x118] ss:$20 sps:$4 sm:$0xff]  }
  0x9f   :  { %818 = vmatprep.subr.bf16.mxu0 %v4255_v48  ;;  %v4299_v48 = vld [vmem:[#allocation11 + $0xf4] ss:$20 sps:$4 sm:$0xff]  }
  0xa2   :  { %819 = vmatpush2.bf16.msra.mxu0 %v4257_v49  ;;  %v4297_v49 = vld [vmem:[#allocation11 + $0xf0] ss:$20 sps:$4 sm:$0xff]  }
  0xa3   :  { %820 = vmatprep.subr.bf16.mxu0 %v4261_v52  ;;  %v4305_v52 = vld [vmem:[#allocation11 + $0xa4] ss:$20 sps:$4 sm:$0xff]  }
  0xa6   :  { %821 = vmatpush2.bf16.msra.mxu0 %v4263_v53  ;;  %v4303_v53 = vld [vmem:[#allocation11 + $0xa0] ss:$20 sps:$4 sm:$0xff]  }
  0xa7   :  { %4130 = vmatprep.subr.bf16.mxu0 %v4947_v11 }
 0x12f   :  { %v240_v3 = vpop.f32.mrf.mxu1 }
 0x130   :  { %v241_v4 = vadd.f32 %v240_v3, %v158_v1  ;;  %v4315_v1 = vld [vmem:[#allocation11] ss:$20 sps:$4 sm:$0xff]   ;;  %v4318_v3 = vld [vmem:[#allocation11 + $0x258] ss:$20 sps:$4 sm:$0xff]  }
 0x131   :  { %v242_v6 = vpop.f32.mrf.mxu1 }
 0x132   :  { %v243_v7 = vadd.f32 %v242_v6, %v162_v2  ;;  %v287_v8 = vmax.f32 %v241_v4, 0.0  ;;  %v4320_v2 = vld [vmem:[#allocation11 + $0x25c] ss:$20 sps:$4 sm:$0xff]   ;;  %v4323_v4 = vld [vmem:[#allocation11 + $0x234] ss:$20 sps:$4 sm:$0xff]  }
 0x133   :  { %v244_v9 = vpop.f32.mrf.mxu1  ;;  %v4321_v6 = vld [vmem:[#allocation11 + $0x230] ss:$20 sps:$4 sm:$0xff]  }
 0x134   :  { %v288_v10 = vmax.f32 %v243_v7, 0.0  ;;  %v5057_v16 = vpack.c.bf16 %v287_v8, %v287_v8  ;;  %v4326_v7 = vld [vmem:[#allocation11 + $0x20c] ss:$20 sps:$4 sm:$0xff]   ;;  %v4324_v8 = vld [vmem:[#allocation11 + $0x208] ss:$20 sps:$4 sm:$0xff]  }
 0x135   :  { %v245_v13 = vpop.f32.mrf.mxu1  ;;  %v4329_v9 = vld [vmem:[#allocation11 + $0x1e4] ss:$20 sps:$4 sm:$0xff]  }
 0x136   :  { %v291_v14 = vpack.c.bf16 %v288_v10, %v288_v10  ;;  %v4327_v10 = vld [vmem:[#allocation11 + $0x1e0] ss:$20 sps:$4 sm:$0xff]   ;;  %v4342_v13 = vld [vmem:[#allocation11 + $0x398] ss:$20 sps:$4 sm:$0xff]  }
 0x137   :  { %v281_v17 = vpop.f32.mrf.mxu1 }
 0x138   :  { %v282_v18 = vadd.f32 %v281_v17, %v166_v12  ;;  %822 = vmatprep.mubr.bf16.mxu0 %v291_v14  ;;  %v4332_v12 = vld [vmem:[#allocation11 + $0x1bc] ss:$20 sps:$4 sm:$0xff]  }
 0x139   :  { %v4128_v19 = vpop.f32.mrf.mxu1  ;;  %823 = vmatmul.mubr.bf16.vlgmr.msra.gmra.mxu0 %v5057_v16  ;;  %v4348_v17 = vld [vmem:[#allocation11 + $0x370] ss:$20 sps:$4 sm:$0xff]  }
 0x13a   :  { %v289_v20 = vmax.f32 %v282_v18, 0.0  ;;  %4131 = vmatpush3.bf16.msra.mxu0 %v4270_v15  ;;  %4146 = vmatprep.mubr.msk.bf16.mxu0 %vm4948_vm1, %v4947_v11  ;;  %v4350_v15 = vld [vmem:[#allocation11 + $0x374] ss:$20 sps:$4 sm:$0xff]   ;;  %v4356_v19 = vld [vmem:[#allocation11 + $0x34c] ss:$20 sps:$4 sm:$0xff]  }
 0x13b   :  { %v284_v22 = vpop.f32.mrf.mxu1  ;;  %4132 = vmatprep.subr.bf16.mxu0 %v4947_v11  ;;  %v4335_v18 = vld [vmem:[#allocation11 + $0x194] ss:$20 sps:$4 sm:$0xff]  }
 0x13c   :  { %v292_v24 = vpack.c.bf16 %v289_v20, %v289_v20  ;;  %v4333_v20 = vld [vmem:[#allocation11 + $0x190] ss:$20 sps:$4 sm:$0xff]   ;;  %v4338_v22 = vld [vmem:[#allocation11 + $0x16c] ss:$20 sps:$4 sm:$0xff]  }
 0x13d   :  { %v4129_v26 = vpop.f32.mrf.mxu1 }
 0x13e   :  { %4133 = vmatpush3.bf16.msra.mxu0 %v4272_v21  ;;  %864 = vmatmul.mubr.bf16.vlgmr.msra.gmra.mxu1 %v292_v24  ;;  %v4354_v21 = vld [vmem:[#allocation11 + $0x348] ss:$20 sps:$4 sm:$0xff]   ;;  %v4341_v26 = vld [vmem:[#allocation11 + $0x144] ss:$20 sps:$4 sm:$0xff]  }
 0x13f   :  { %4017 = vmatpush3.bf16.msra.mxu1 %v4273_v23  ;;  %904 = vmatprep.mubr.bf16.mxu1 %v291_v14  ;;  %v4344_v14 = vld [vmem:[#allocation11 + $0x39c] ss:$20 sps:$4 sm:$0xff]   ;;  %v4362_v23 = vld [vmem:[#allocation11 + $0x324] ss:$20 sps:$4 sm:$0xff]  }
 0x140   :  { %4134 = vmatprep.subr.bf16.mxu0 %v4947_v11  ;;  %4018 = vmatprep.subr.bf16.mxu1 %v4274_v25  ;;  %v4360_v25 = vld [vmem:[#allocation11 + $0x320] ss:$20 sps:$4 sm:$0xff]  }
 0x142   :  { %4135 = vmatpush3.bf16.msra.mxu0 %v4275_v27  ;;  %v4339_v27 = vld [vmem:[#allocation11 + $0x140] ss:$20 sps:$4 sm:$0xff]  }
 0x143   :  { %4019 = vmatpush3.bf16.msra.mxu1 %v4276_v28  ;;  %4136 = vmatprep.subr.bf16.mxu0 %v4947_v11  ;;  %v4347_v28 = vld [vmem:[#allocation11 + $0x3a4] ss:$20 sps:$4 sm:$0xff]  }
 0x144   :  { %4020 = vmatprep.subr.bf16.mxu1 %v4277_v29  ;;  %v4368_v29 = vld [vmem:[#allocation11 + $0x2fc] ss:$20 sps:$4 sm:$0xff]  }
 0x146   :  { %4137 = vmatpush3.bf16.msra.mxu0 %v4278_v30  ;;  %v4366_v30 = vld [vmem:[#allocation11 + $0x2f8] ss:$20 sps:$4 sm:$0xff]  }
 0x147   :  { %4021 = vmatpush3.bf16.msra.mxu1 %v4279_v31  ;;  %4138 = vmatprep.subr.bf16.mxu0 %v4947_v11  ;;  %v4374_v31 = vld [vmem:[#allocation11 + $0x2d4] ss:$20 sps:$4 sm:$0xff]  }
 0x148   :  { %4022 = vmatprep.subr.bf16.mxu1 %v4280_v32  ;;  %v4372_v32 = vld [vmem:[#allocation11 + $0x2d0] ss:$20 sps:$4 sm:$0xff]  }
 0x14a   :  { %4139 = vmatpush3.bf16.msra.mxu0 %v4281_v33  ;;  %v4380_v33 = vld [vmem:[#allocation11 + $0x2ac] ss:$20 sps:$4 sm:$0xff]  }
 0x14b   :  { %4023 = vmatpush3.bf16.msra.mxu1 %v4282_v34  ;;  %4140 = vmatprep.subr.bf16.mxu0 %v4947_v11  ;;  %v4378_v34 = vld [vmem:[#allocation11 + $0x2a8] ss:$20 sps:$4 sm:$0xff]  }
 0x14c   :  { %4024 = vmatprep.subr.bf16.mxu1 %v4283_v35  ;;  %v4386_v35 = vld [vmem:[#allocation11 + $0x284] ss:$20 sps:$4 sm:$0xff]  }
 0x14e   :  { %4141 = vmatpush3.bf16.msra.mxu0 %v4284_v36  ;;  %v4384_v36 = vld [vmem:[#allocation11 + $0x280] ss:$20 sps:$4 sm:$0xff]  }
 0x14f   :  { %4025 = vmatpush3.bf16.msra.mxu1 %v4285_v37  ;;  %4142 = vmatprep.subr.bf16.mxu0 %v4947_v11  ;;  %v4392_v37 = vld [vmem:[#allocation11 + $0x124] ss:$20 sps:$4 sm:$0xff]  }
 0x150   :  { %4026 = vmatprep.subr.bf16.mxu1 %v4286_v38  ;;  %v389_v38 = vld [vmem:[#allocation10] sm:$0x7] }
 0x152   :  { %4143 = vmatpush3.bf16.msra.mxu0 %v4287_v39  ;;  %v394_v39 = vrot.slane %v389_v38, %v5046_v61 }
 0x153   :  { %4027 = vmatpush3.bf16.msra.mxu1 %v4288_v40  ;;  %4144 = vmatprep.subr.bf16.mxu0 %v4947_v11 }
 0x154   :  { %4028 = vmatprep.subr.bf16.mxu1 %v4289_v41  ;;  %v398_v41 = vrot.slane %v389_v38, %v5049_v63 }
 0x156   :  { %4145 = vmatpush3.bf16.msra.mxu0 %v4290_v42 }
 0x157   :  { %4029 = vmatpush3.bf16.msra.mxu1 %v4291_v43  ;;  %1794 = vmatprep.subr.bf16.mxu0 %v4344_v14  ;;  %v4381_v14 = vld [vmem:[#allocation11 + $0x2b0] ss:$20 sps:$4 sm:$0xff]  }
 0x158   :  { %4030 = vmatprep.subr.bf16.mxu1 %v4292_v44 }
 0x159   :  { %4147 = vmatmul.mubr.bf16.vlgmr.msra.gmra.mxu0 %v292_v24  ;;  %v4336_v24 = vld [vmem:[#allocation11 + $0x168] ss:$20 sps:$4 sm:$0xff]  }
 0x15a   :  { %1826 = vmatprep.mubr.bf16.mxu0 %v4946_v0  ;;  %1795 = vmatpush1.bf16.msra.mxu0 %v4342_v13 }
 0x15b   :  { %4031 = vmatpush3.bf16.msra.mxu1 %v4293_v45  ;;  %1796 = vmatprep.subr.bf16.mxu0 %v4350_v15 }
 0x15c   :  { %1753 = vmatprep.subr.bf16.mxu1 %v4296_v46 }
 0x15e   :  { %905 = vmatmul.mubr.bf16.vlgmr.msra.gmra.mxu1 %v5057_v16  ;;  %v4330_v16 = vld [vmem:[#allocation11 + $0x1b8] ss:$20 sps:$4 sm:$0xff]   ;;  %1797 = vmatpush1.bf16.msra.mxu0 %v4348_v17 }
 0x15f   :  { %1754 = vmatpush1.bf16.msra.mxu1 %v4294_v47  ;;  %1798 = vmatprep.subr.bf16.mxu0 %v4356_v19 }
 0x160   :  { %1755 = vmatprep.subr.bf16.mxu1 %v4299_v48 }
 0x162   :  { %1799 = vmatpush1.bf16.msra.mxu0 %v4354_v21  ;;  %v4387_v21 = vld [vmem:[#allocation11 + $0x288] ss:$20 sps:$4 sm:$0xff]  }
 0x163   :  { %1756 = vmatpush1.bf16.msra.mxu1 %v4297_v49  ;;  %1800 = vmatprep.subr.bf16.mxu0 %v4362_v23  ;;  %v4393_v23 = vld [vmem:[#allocation11 + $0x268] ss:$20 sps:$4 sm:$0xff]  }
 0x164   :  { %1757 = vmatprep.subr.bf16.mxu1 %v4302_v50 }
 0x166   :  { %1801 = vmatpush1.bf16.msra.mxu0 %v4360_v25 }
 0x167   :  { %1758 = vmatpush1.bf16.msra.mxu1 %v4300_v51  ;;  %1802 = vmatprep.subr.bf16.mxu0 %v4368_v29  ;;  %v4394_v29 = vld [vmem:[#allocation11 + $0x128] ss:$20 sps:$4 sm:$0xff]  }
 0x168   :  { %1759 = vmatprep.subr.bf16.mxu1 %v4305_v52 }
 0x16a   :  { %1803 = vmatpush1.bf16.msra.mxu0 %v4366_v30 }
 0x16b   :  { %1760 = vmatpush1.bf16.msra.mxu1 %v4303_v53  ;;  %1804 = vmatprep.subr.bf16.mxu0 %v4374_v31  ;;  %v4397_v31 = vld [vmem:[#allocation11 + $0xfc] ss:$20 sps:$4 sm:$0xff]  }
 0x16c   :  { %1761 = vmatprep.subr.bf16.mxu1 %v4308_v54 }
 0x16e   :  { %1805 = vmatpush1.bf16.msra.mxu0 %v4372_v32  ;;  %v4398_v32 = vld [vmem:[#allocation11 + $0x240] ss:$20 sps:$4 sm:$0xff]  }
 0x16f   :  { %1762 = vmatpush1.bf16.msra.mxu1 %v4306_v55  ;;  %1806 = vmatprep.subr.bf16.mxu0 %v4380_v33  ;;  %v4395_v33 = vld [vmem:[#allocation11 + $0xf8] ss:$20 sps:$4 sm:$0xff]  }
 0x170   :  { %1763 = vmatprep.subr.bf16.mxu1 %v4311_v56  ;;  %v4345_v56 = vld [vmem:[#allocation11 + $0x3a0] ss:$20 sps:$4 sm:$0xff]  }
 0x172   :  { %1807 = vmatpush1.bf16.msra.mxu0 %v4378_v34  ;;  %v4399_v34 = vld [vmem:[#allocation11 + $0x100] ss:$20 sps:$4 sm:$0xff]  }
 0x173   :  { %1764 = vmatpush1.bf16.msra.mxu1 %v4309_v57  ;;  %1808 = vmatprep.subr.bf16.mxu0 %v4386_v35  ;;  %v4402_v35 = vld [vmem:[#allocation11 + $0xd4] ss:$20 sps:$4 sm:$0xff]  }
 0x174   :  { %1765 = vmatprep.subr.bf16.mxu1 %v4314_v58  ;;  %v4353_v58 = vld [vmem:[#allocation11 + $0x37c] ss:$20 sps:$4 sm:$0xff]  }
 0x176   :  { %1809 = vmatpush1.bf16.msra.mxu0 %v4384_v36  ;;  %v4403_v36 = vld [vmem:[#allocation11 + $0x218] ss:$20 sps:$4 sm:$0xff]  }
 0x177   :  { %1766 = vmatpush1.bf16.msra.mxu1 %v4312_v59  ;;  %1835 = vmatprep.subr.bf16.mxu0 %v4392_v37  ;;  %v4351_v59 = vld [vmem:[#allocation11 + $0x378] ss:$20 sps:$4 sm:$0xff]   ;;  %v4400_v37 = vld [vmem:[#allocation11 + $0xd0] ss:$20 sps:$4 sm:$0xff]  }
 0x178   :  { %1767 = vmatprep.subr.bf16.mxu1 %v4317_v62  ;;  %v4359_v62 = vld [vmem:[#allocation11 + $0x354] ss:$20 sps:$4 sm:$0xff]  }
 0x17b   :  { %1768 = vmatpush1.bf16.msra.mxu1 %v4315_v1  ;;  %v4357_v1 = vld [vmem:[#allocation11 + $0x350] ss:$20 sps:$4 sm:$0xff]  }
 0x17c   :  { %1769 = vmatprep.subr.bf16.mxu1 %v4320_v2  ;;  %v4365_v2 = vld [vmem:[#allocation11 + $0x32c] ss:$20 sps:$4 sm:$0xff]  }
 0x17f   :  { %1770 = vmatpush2.bf16.msra.mxu1 %v4318_v3  ;;  %v4363_v3 = vld [vmem:[#allocation11 + $0x328] ss:$20 sps:$4 sm:$0xff]  }
 0x180   :  { %1771 = vmatprep.subr.bf16.mxu1 %v4323_v4  ;;  %v4371_v4 = vld [vmem:[#allocation11 + $0x304] ss:$20 sps:$4 sm:$0xff]  }
 0x183   :  { %1772 = vmatpush2.bf16.msra.mxu1 %v4321_v6  ;;  %v4369_v6 = vld [vmem:[#allocation11 + $0x300] ss:$20 sps:$4 sm:$0xff]  }
 0x184   :  { %1773 = vmatprep.subr.bf16.mxu1 %v4326_v7  ;;  %v4377_v7 = vld [vmem:[#allocation11 + $0x2dc] ss:$20 sps:$4 sm:$0xff]  }
 0x187   :  { %1774 = vmatpush2.bf16.msra.mxu1 %v4324_v8 }
 0x188   :  { %1775 = vmatprep.subr.bf16.mxu1 %v4329_v9  ;;  %v4375_v9 = vld [vmem:[#allocation11 + $0x2d8] ss:$20 sps:$4 sm:$0xff]  }
 0x18b   :  { %1776 = vmatpush2.bf16.msra.mxu1 %v4327_v10  ;;  %v4383_v10 = vld [vmem:[#allocation11 + $0x2b4] ss:$20 sps:$4 sm:$0xff]  }
 0x18c   :  { %1777 = vmatprep.subr.bf16.mxu1 %v4332_v12 }
 0x18f   :  { %1778 = vmatpush2.bf16.msra.mxu1 %v4330_v16  ;;  %v4389_v16 = vld [vmem:[#allocation11 + $0x28c] ss:$20 sps:$4 sm:$0xff]  }
 0x190   :  { %1779 = vmatprep.subr.bf16.mxu1 %v4335_v18  ;;  %v402_v18 = vrot.slane %v389_v38, %v5054_v5  ;;  %v4404_v38 = vld [vmem:[#allocation11 + $0xd8] ss:$20 sps:$4 sm:$0xff]  }
 0x193   :  { %1780 = vmatpush2.bf16.msra.mxu1 %v4333_v20 }
 0x194   :  { %1781 = vmatprep.subr.bf16.mxu1 %v4338_v22 }
 0x197   :  { %1782 = vmatpush2.bf16.msra.mxu1 %v4336_v24 }
 0x198   :  { %1783 = vmatprep.subr.bf16.mxu1 %v4341_v26 }
 0x19b   :  { %1784 = vmatpush2.bf16.msra.mxu1 %v4339_v27 }
 0x19c   :  { %1876 = vmatprep.subr.bf16.mxu1 %v4347_v28  ;;  %v4390_v28 = vld [vmem:[#allocation11 + $0x120] ss:$20 sps:$4 sm:$0xff]  }
 0x1f9   :  { %v824_v40 = vpop.f32.mrf.mxu0 }
 0x1fa   :  { %v825_v43 = vadd.f32 %v824_v40, %v394_v39  ;;  %v4407_v39 = vld [vmem:[#allocation11 + $0xac] ss:$20 sps:$4 sm:$0xff]   ;;  %v4408_v40 = vld [vmem:[#allocation11 + $0x1f0] ss:$20 sps:$4 sm:$0xff]  }
 0x1fb   :  { %v826_v42 = vpop.f32.mrf.mxu0 }
 0x1fc   :  { %v827_v46 = vadd.f32 %v826_v42, %v398_v41  ;;  %v4405_v41 = vld [vmem:[#allocation11 + $0xa8] ss:$20 sps:$4 sm:$0xff]   ;;  %v4409_v42 = vld [vmem:[#allocation11 + $0xb0] ss:$20 sps:$4 sm:$0xff]  }
 0x1fd   :  { %v828_v44 = vpop.f32.mrf.mxu0 }
 0x1fe   :  { %v865_v45 = vpop.f32.mrf.mxu1  ;;  %v4413_v44 = vld [vmem:[#allocation11 + $0x1c8] ss:$20 sps:$4 sm:$0xff]  }
 0x1ff   :  { %v866_v47 = vadd.f32 %v865_v45, %v825_v43  ;;  %v829_v48 = vpop.f32.mrf.mxu0  ;;  %v4412_v43 = vld [vmem:[#allocation11 + $0x84] ss:$20 sps:$4 sm:$0xff]   ;;  %v4410_v45 = vld [vmem:[#allocation11 + $0x80] ss:$20 sps:$4 sm:$0xff]  }
 0x200   :  { %v867_v49 = vpop.f32.mrf.mxu1  ;;  %v4418_v48 = vld [vmem:[#allocation11 + $0x1a0] ss:$20 sps:$4 sm:$0xff]  }
 0x201   :  { %v868_v50 = vadd.f32 %v867_v49, %v827_v46  ;;  %v952_v51 = vmax.f32 %v866_v47, 0.0  ;;  %v4414_v46 = vld [vmem:[#allocation11 + $0x88] ss:$20 sps:$4 sm:$0xff]   ;;  %v4415_v49 = vld [vmem:[#allocation11 + $0x58] ss:$20 sps:$4 sm:$0xff]  }
 0x202   :  { %v869_v52 = vpop.f32.mrf.mxu1  ;;  %v4417_v47 = vld [vmem:[#allocation11 + $0x5c] ss:$20 sps:$4 sm:$0xff]  }
 0x203   :  { %v953_v53 = vmax.f32 %v868_v50, 0.0  ;;  %v5073_v57 = vpack.c.bf16 %v952_v51, %v952_v51  ;;  %v4419_v50 = vld [vmem:[#allocation11 + $0x60] ss:$20 sps:$4 sm:$0xff]   ;;  %v4423_v52 = vld [vmem:[#allocation11 + $0x178] ss:$20 sps:$4 sm:$0xff]  }
 0x204   :  { %v870_v54 = vpop.f32.mrf.mxu1  ;;  %v4422_v51 = vld [vmem:[#allocation11 + $0x34] ss:$20 sps:$4 sm:$0xff]  }
 0x205   :  { %v956_v55 = vpack.c.bf16 %v953_v53, %v953_v53  ;;  %v4420_v53 = vld [vmem:[#allocation11 + $0x30] ss:$20 sps:$4 sm:$0xff]   ;;  %v4424_v54 = vld [vmem:[#allocation11 + $0x38] ss:$20 sps:$4 sm:$0xff]  }
 0x207   :  { %1785 = vmatprep.mubr.bf16.mxu1 %v956_v55 }
 0x208   :  { %1786 = vmatmul.mubr.bf16.vlgmr.msra.gmra.mxu1 %v5073_v57 }
 0x209   :  { %1877 = vmatpush1.bf16.msra.mxu1 %v4345_v56  ;;  %1908 = vmatprep.mubr.bf16.mxu1 %v4946_v0  ;;  %v4428_v56 = vld [vmem:[#allocation11 + $0x150] ss:$20 sps:$4 sm:$0xff]  }
 0x20a   :  { %1878 = vmatprep.subr.bf16.mxu1 %v4353_v58  ;;  %v4425_v58 = vld [vmem:[#allocation11 + $0x8] ss:$20 sps:$4 sm:$0xff]  }
 0x20d   :  { %1879 = vmatpush1.bf16.msra.mxu1 %v4351_v59  ;;  %v4429_v59 = vld [vmem:[#allocation11 + $0x10] ss:$20 sps:$4 sm:$0xff]  }
 0x20e   :  { %1880 = vmatprep.subr.bf16.mxu1 %v4359_v62  ;;  %v4432_v62 = vld [vmem:[#allocation11 + $0x264] ss:$20 sps:$4 sm:$0xff]  }
 0x211   :  { %1881 = vmatpush1.bf16.msra.mxu1 %v4357_v1  ;;  %v4464_v1 = vld [vmem:[#allocation13 + $0xe4] ss:$16 sps:$4 sm:$0xff]  }
 0x212   :  { %1882 = vmatprep.subr.bf16.mxu1 %v4365_v2  ;;  %v4430_v2 = vld [vmem:[#allocation11 + $0x260] ss:$20 sps:$4 sm:$0xff]  }
 0x215   :  { %1883 = vmatpush1.bf16.msra.mxu1 %v4363_v3  ;;  %v4462_v3 = vld [vmem:[#allocation13 + $0xe0] ss:$16 sps:$4 sm:$0xff]  }
 0x216   :  { %1884 = vmatprep.subr.bf16.mxu1 %v4371_v4  ;;  %v4435_v4 = vld [vmem:[#allocation11 + $0x23c] ss:$20 sps:$4 sm:$0xff]  }
 0x219   :  { %v946_v8 = vpop.f32.mrf.mxu0  ;;  %1885 = vmatpush1.bf16.msra.mxu1 %v4369_v6  ;;  %v4467_v6 = vld [vmem:[#allocation13 + $0xc4] ss:$16 sps:$4 sm:$0xff]  }
 0x21a   :  { %1886 = vmatprep.subr.bf16.mxu1 %v4377_v7  ;;  %v4433_v7 = vld [vmem:[#allocation11 + $0x238] ss:$20 sps:$4 sm:$0xff]  }
 0x21b   :  { %v4148_v12 = vpop.f32.mrf.mxu0 }
 0x21c   :  { %v4436_v12 = vld [vmem:[#allocation11 + $0x210] ss:$20 sps:$4 sm:$0xff]  }
 0x21d   :  { %v949_v13 = vpop.f32.mrf.mxu0  ;;  %1887 = vmatpush1.bf16.msra.mxu1 %v4375_v9  ;;  %v4438_v9 = vld [vmem:[#allocation11 + $0x214] ss:$20 sps:$4 sm:$0xff]  }
 0x21e   :  { %v4032_v15 = vpop.f32.mrf.mxu1  ;;  %1888 = vmatprep.subr.bf16.mxu1 %v4383_v10  ;;  %v4470_v10 = vld [vmem:[#allocation13 + $0xa4] ss:$16 sps:$4 sm:$0xff]   ;;  %v4468_v13 = vld [vmem:[#allocation13 + $0xa0] ss:$16 sps:$4 sm:$0xff]  }
 0x21f   :  { %v4149_v17 = vpop.f32.mrf.mxu0 }
 0x220   :  { %v4033_v19 = vpop.f32.mrf.mxu1  ;;  %v4471_v17 = vld [vmem:[#allocation13 + $0x80] ss:$16 sps:$4 sm:$0xff]  }
 0x221   :  { %v4034_v20 = vadd.f32 %v4033_v19, %v4032_v15  ;;  %1889 = vmatpush1.bf16.msra.mxu1 %v4381_v14  ;;  %v4441_v14 = vld [vmem:[#allocation11 + $0x1ec] ss:$20 sps:$4 sm:$0xff]   ;;  %v4473_v15 = vld [vmem:[#allocation13 + $0x84] ss:$16 sps:$4 sm:$0xff]  }
 0x222   :  { %v4035_v22 = vpop.f32.mrf.mxu1  ;;  %1890 = vmatprep.subr.bf16.mxu1 %v4389_v16  ;;  %v4439_v16 = vld [vmem:[#allocation11 + $0x1e8] ss:$20 sps:$4 sm:$0xff]   ;;  %v4476_v19 = vld [vmem:[#allocation13 + $0x64] ss:$16 sps:$4 sm:$0xff]  }
 0x223   :  { %v907_v24 = vadd.f32 %v4034_v20, %v402_v18  ;;  %v4444_v18 = vld [vmem:[#allocation11 + $0x1c4] ss:$20 sps:$4 sm:$0xff]   ;;  %v4442_v20 = vld [vmem:[#allocation11 + $0x1c0] ss:$20 sps:$4 sm:$0xff]   ;;  %v4447_v22 = vld [vmem:[#allocation11 + $0x19c] ss:$20 sps:$4 sm:$0xff]  }
 0x224   :  { %v4036_v25 = vpop.f32.mrf.mxu1 }
 0x225   :  { %v947_v26 = vadd.f32 %v946_v8, %v907_v24  ;;  %1891 = vmatpush1.bf16.msra.mxu1 %v4387_v21  ;;  %v4465_v8 = vld [vmem:[#allocation13 + $0xc0] ss:$16 sps:$4 sm:$0xff]   ;;  %v4445_v24 = vld [vmem:[#allocation11 + $0x198] ss:$20 sps:$4 sm:$0xff]  }
 0x226   :  { %4047 = vmatprep.subr.bf16.mxu1 %v4393_v23  ;;  %v4474_v21 = vld [vmem:[#allocation13 + $0x60] ss:$16 sps:$4 sm:$0xff]   ;;  %v4479_v23 = vld [vmem:[#allocation13 + $0x44] ss:$16 sps:$4 sm:$0xff]  }
 0x227   :  { %v954_v27 = vmax.f32 %v947_v26, 0.0  ;;  %v4477_v25 = vld [vmem:[#allocation13 + $0x40] ss:$16 sps:$4 sm:$0xff]   ;;  %v4450_v26 = vld [vmem:[#allocation11 + $0x174] ss:$20 sps:$4 sm:$0xff]  }
 0x229   :  { %v5078_v30 = vpack.c.bf16 %v954_v27, %v954_v27  ;;  %v4482_v27 = vld [vmem:[#allocation13 + $0x24] ss:$16 sps:$4 sm:$0xff]  }
 0x22b   :  { %1827 = vmatmul.mubr.bf16.vlgmr.msra.gmra.mxu0 %v5078_v30  ;;  %1909 = vmatmul.mubr.bf16.vlgmr.msra.gmra.mxu1 %v5078_v30 }
 0x22c   :  { %1836 = vmatpush1.bf16.msra.mxu0 %v4390_v28  ;;  %4048 = vmatpush3.bf16.msra.mxu1 %v4394_v29  ;;  %v4448_v28 = vld [vmem:[#allocation11 + $0x170] ss:$20 sps:$4 sm:$0xff]  }
 0x22d   :  { %1867 = vmatprep.mubr.bf16.mxu0 %v956_v55  ;;  %1949 = vmatprep.mubr.bf16.mxu1 %v956_v55  ;;  %v4427_v55 = vld [vmem:[#allocation11 + $0xc] ss:$20 sps:$4 sm:$0xff]  }
 0x22e   :  { %1837 = vmatprep.subr.bf16.mxu0 %v4397_v31  ;;  %4049 = vmatprep.subr.bf16.mxu1 %v4398_v32  ;;  %v4480_v29 = vld [vmem:[#allocation13 + $0x20] ss:$16 sps:$4 sm:$0xff]   ;;  %v4485_v32 = vld [vmem:[#allocation13 + $0x4] ss:$16 sps:$4 sm:$0xff]  }
 0x22f   :  { %v4453_v31 = vld [vmem:[#allocation11 + $0x14c] ss:$20 sps:$4 sm:$0xff]  }
 0x230   :  { %1838 = vmatpush1.bf16.msra.mxu0 %v4395_v33  ;;  %4050 = vmatpush3.bf16.msra.mxu1 %v4399_v34  ;;  %v4451_v33 = vld [vmem:[#allocation11 + $0x148] ss:$20 sps:$4 sm:$0xff]   ;;  %v4483_v34 = vld [vmem:[#allocation13] ss:$16 sps:$4 sm:$0xff]  }
 0x231   :  { %1839 = vmatprep.subr.bf16.mxu0 %v4402_v35  ;;  %4051 = vmatprep.subr.bf16.mxu1 %v4403_v36  ;;  %v4488_v35 = vld [vmem:[#allocation13 + $0x1e4] ss:$16 sps:$4 sm:$0xff]   ;;  %v4454_v36 = vld [vmem:[#allocation11 + $0x3a8] ss:$20 sps:$4 sm:$0xff]  }
 0x234   :  { %1840 = vmatpush1.bf16.msra.mxu0 %v4400_v37  ;;  %4052 = vmatpush3.bf16.msra.mxu1 %v4404_v38  ;;  %v4486_v37 = vld [vmem:[#allocation13 + $0x1e0] ss:$16 sps:$4 sm:$0xff]   ;;  %v4491_v38 = vld [vmem:[#allocation13 + $0x1c4] ss:$16 sps:$4 sm:$0xff]  }
 0x235   :  { %1841 = vmatprep.subr.bf16.mxu0 %v4407_v39  ;;  %4053 = vmatprep.subr.bf16.mxu1 %v4408_v40  ;;  %v4455_v39 = vld [vmem:[#allocation11 + $0x380] ss:$20 sps:$4 sm:$0xff]  }
 0x236   :  { %v4489_v40 = vld [vmem:[#allocation13 + $0x1c0] ss:$16 sps:$4 sm:$0xff]  }
 0x238   :  { %1842 = vmatpush1.bf16.msra.mxu0 %v4405_v41  ;;  %4054 = vmatpush3.bf16.msra.mxu1 %v4409_v42  ;;  %v4494_v41 = vld [vmem:[#allocation13 + $0x1a4] ss:$16 sps:$4 sm:$0xff]   ;;  %v4456_v42 = vld [vmem:[#allocation11 + $0x358] ss:$20 sps:$4 sm:$0xff]  }
 0x239   :  { %1843 = vmatprep.subr.bf16.mxu0 %v4412_v43  ;;  %4055 = vmatprep.subr.bf16.mxu1 %v4413_v44  ;;  %v4492_v43 = vld [vmem:[#allocation13 + $0x1a0] ss:$16 sps:$4 sm:$0xff]   ;;  %v4497_v44 = vld [vmem:[#allocation13 + $0x184] ss:$16 sps:$4 sm:$0xff]  }
 0x23c   :  { %1844 = vmatpush1.bf16.msra.mxu0 %v4410_v45  ;;  %4056 = vmatpush3.bf16.msra.mxu1 %v4414_v46  ;;  %v4495_v45 = vld [vmem:[#allocation13 + $0x180] ss:$16 sps:$4 sm:$0xff]   ;;  %v4500_v46 = vld [vmem:[#allocation13 + $0x164] ss:$16 sps:$4 sm:$0xff]  }
 0x23d   :  { %1845 = vmatprep.subr.bf16.mxu0 %v4417_v47  ;;  %4057 = vmatprep.subr.bf16.mxu1 %v4418_v48  ;;  %v4458_v47 = vld [vmem:[#allocation11 + $0x308] ss:$20 sps:$4 sm:$0xff]   ;;  %v4498_v48 = vld [vmem:[#allocation13 + $0x160] ss:$16 sps:$4 sm:$0xff]  }
 0x240   :  { %1846 = vmatpush1.bf16.msra.mxu0 %v4415_v49  ;;  %4058 = vmatpush3.bf16.msra.mxu1 %v4419_v50  ;;  %v4503_v49 = vld [vmem:[#allocation13 + $0x144] ss:$16 sps:$4 sm:$0xff]  }
 0x241   :  { %1847 = vmatprep.subr.bf16.mxu0 %v4422_v51  ;;  %4059 = vmatprep.subr.bf16.mxu1 %v4423_v52  ;;  %v4459_v50 = vld [vmem:[#allocation11 + $0x2e0] ss:$20 sps:$4 sm:$0xff]  }
 0x242   :  { %v4501_v51 = vld [vmem:[#allocation13 + $0x140] ss:$16 sps:$4 sm:$0xff]   ;;  %v4506_v52 = vld [vmem:[#allocation13 + $0x124] ss:$16 sps:$4 sm:$0xff]  }
 0x244   :  { %1848 = vmatpush1.bf16.msra.mxu0 %v4420_v53  ;;  %4060 = vmatpush3.bf16.msra.mxu1 %v4424_v54  ;;  %v4460_v53 = vld [vmem:[#allocation11 + $0x2b8] ss:$20 sps:$4 sm:$0xff]   ;;  %v4504_v54 = vld [vmem:[#allocation13 + $0x120] ss:$16 sps:$4 sm:$0xff]  }
 0x245   :  { %1849 = vmatprep.subr.bf16.mxu0 %v4427_v55  ;;  %4061 = vmatprep.subr.bf16.mxu1 %v4428_v56  ;;  %v4509_v55 = vld [vmem:[#allocation13 + $0x104] ss:$16 sps:$4 sm:$0xff]  }
 0x246   :  { %v4461_v56 = vld [vmem:[#allocation11 + $0x290] ss:$20 sps:$4 sm:$0xff]  }
 0x248   :  { %1850 = vmatpush1.bf16.msra.mxu0 %v4425_v58  ;;  %4062 = vmatpush3.bf16.msra.mxu1 %v4429_v59  ;;  %v4507_v58 = vld [vmem:[#allocation13 + $0x100] ss:$16 sps:$4 sm:$0xff]   ;;  %v4512_v59 = vld [vmem:[#allocation13 + $0x2e4] ss:$16 sps:$4 sm:$0xff]  }
 0x249   :  { %1851 = vmatprep.subr.bf16.mxu0 %v4432_v62  ;;  %2989 = vmatprep.subr.bf16.mxu1 %v4464_v1  ;;  %v4510_v62 = vld [vmem:[#allocation13 + $0x2e0] ss:$16 sps:$4 sm:$0xff]   ;;  %v4515_v1 = vld [vmem:[#allocation13 + $0x2c4] ss:$16 sps:$4 sm:$0xff]  }
 0x24b   :  { %1950 = vmatmul.mubr.bf16.vlgmr.msra.gmra.mxu1 %v5073_v57 }
 0x24c   :  { %1852 = vmatpush2.bf16.msra.mxu0 %v4430_v2  ;;  %2990 = vmatpush1.bf16.msra.mxu1 %v4462_v3  ;;  %v4513_v2 = vld [vmem:[#allocation13 + $0x2c0] ss:$16 sps:$4 sm:$0xff]   ;;  %v4518_v3 = vld [vmem:[#allocation13 + $0x2a4] ss:$16 sps:$4 sm:$0xff]  }
 0x24d   :  { %1853 = vmatprep.subr.bf16.mxu0 %v4435_v4  ;;  %2991 = vmatprep.subr.bf16.mxu1 %v4467_v6  ;;  %v4516_v4 = vld [vmem:[#allocation13 + $0x2a0] ss:$16 sps:$4 sm:$0xff]   ;;  %v4521_v6 = vld [vmem:[#allocation13 + $0x284] ss:$16 sps:$4 sm:$0xff]  }
 0x250   :  { %1854 = vmatpush2.bf16.msra.mxu0 %v4433_v7  ;;  %2992 = vmatpush1.bf16.msra.mxu1 %v4465_v8  ;;  %v4524_v7 = vld [vmem:[#allocation13 + $0x264] ss:$16 sps:$4 sm:$0xff]   ;;  %v4522_v8 = vld [vmem:[#allocation13 + $0x260] ss:$16 sps:$4 sm:$0xff]  }
 0x251   :  { %1855 = vmatprep.subr.bf16.mxu0 %v4438_v9  ;;  %2993 = vmatprep.subr.bf16.mxu1 %v4470_v10  ;;  %v4527_v9 = vld [vmem:[#allocation13 + $0x244] ss:$16 sps:$4 sm:$0xff]   ;;  %v4525_v10 = vld [vmem:[#allocation13 + $0x240] ss:$16 sps:$4 sm:$0xff]  }
 0x254   :  { %1856 = vmatpush2.bf16.msra.mxu0 %v4436_v12  ;;  %2994 = vmatpush1.bf16.msra.mxu1 %v4468_v13  ;;  %v4528_v12 = vld [vmem:[#allocation13 + $0x220] ss:$16 sps:$4 sm:$0xff]   ;;  %v4533_v13 = vld [vmem:[#allocation13 + $0x204] ss:$16 sps:$4 sm:$0xff]  }
 0x255   :  { %1857 = vmatprep.subr.bf16.mxu0 %v4441_v14  ;;  %2995 = vmatprep.subr.bf16.mxu1 %v4473_v15  ;;  %v4531_v14 = vld [vmem:[#allocation13 + $0x200] ss:$16 sps:$4 sm:$0xff]   ;;  %v4536_v15 = vld [vmem:[#allocation13 + $0x3e4] ss:$16 sps:$4 sm:$0xff]  }
 0x258   :  { %1858 = vmatpush2.bf16.msra.mxu0 %v4439_v16  ;;  %2996 = vmatpush1.bf16.msra.mxu1 %v4471_v17  ;;  %v4534_v16 = vld [vmem:[#allocation13 + $0x3e0] ss:$16 sps:$4 sm:$0xff]   ;;  %v4539_v17 = vld [vmem:[#allocation13 + $0x3c4] ss:$16 sps:$4 sm:$0xff]  }
 0x259   :  { %1859 = vmatprep.subr.bf16.mxu0 %v4444_v18  ;;  %2997 = vmatprep.subr.bf16.mxu1 %v4476_v19  ;;  %v4537_v18 = vld [vmem:[#allocation13 + $0x3c0] ss:$16 sps:$4 sm:$0xff]   ;;  %v4542_v19 = vld [vmem:[#allocation13 + $0x3a4] ss:$16 sps:$4 sm:$0xff]  }
 0x25c   :  { %1860 = vmatpush2.bf16.msra.mxu0 %v4442_v20  ;;  %2998 = vmatpush1.bf16.msra.mxu1 %v4474_v21  ;;  %v4557_v20 = vld [vmem:[#allocation13 + $0x4e4] ss:$16 sps:$4 sm:$0xff]   ;;  %v4540_v21 = vld [vmem:[#allocation13 + $0x3a0] ss:$16 sps:$4 sm:$0xff]  }
 0x25d   :  { %1861 = vmatprep.subr.bf16.mxu0 %v4447_v22  ;;  %2999 = vmatprep.subr.bf16.mxu1 %v4479_v23  ;;  %v4545_v22 = vld [vmem:[#allocation13 + $0x384] ss:$16 sps:$4 sm:$0xff]   ;;  %v4543_v23 = vld [vmem:[#allocation13 + $0x380] ss:$16 sps:$4 sm:$0xff]  }
 0x260   :  { %1862 = vmatpush2.bf16.msra.mxu0 %v4445_v24  ;;  %3000 = vmatpush1.bf16.msra.mxu1 %v4477_v25  ;;  %v4548_v24 = vld [vmem:[#allocation13 + $0x364] ss:$16 sps:$4 sm:$0xff]   ;;  %v4546_v25 = vld [vmem:[#allocation13 + $0x360] ss:$16 sps:$4 sm:$0xff]  }
 0x261   :  { %1863 = vmatprep.subr.bf16.mxu0 %v4450_v26  ;;  %3001 = vmatprep.subr.bf16.mxu1 %v4482_v27  ;;  %v4551_v26 = vld [vmem:[#allocation13 + $0x344] ss:$16 sps:$4 sm:$0xff]   ;;  %v4549_v27 = vld [vmem:[#allocation13 + $0x340] ss:$16 sps:$4 sm:$0xff]  }
 0x264   :  { %1864 = vmatpush2.bf16.msra.mxu0 %v4448_v28  ;;  %3002 = vmatpush1.bf16.msra.mxu1 %v4480_v29  ;;  %v4554_v28 = vld [vmem:[#allocation13 + $0x324] ss:$16 sps:$4 sm:$0xff]   ;;  %v4552_v29 = vld [vmem:[#allocation13 + $0x320] ss:$16 sps:$4 sm:$0xff]  }
 0x265   :  { %1865 = vmatprep.subr.bf16.mxu0 %v4453_v31  ;;  %3003 = vmatprep.subr.bf16.mxu1 %v4485_v32  ;;  %v4560_v31 = vld [vmem:[#allocation13 + $0x304] ss:$16 sps:$4 sm:$0xff]   ;;  %v4558_v32 = vld [vmem:[#allocation13 + $0x300] ss:$16 sps:$4 sm:$0xff]  }
 0x268   :  { %1866 = vmatpush2.bf16.msra.mxu0 %v4451_v33  ;;  %3004 = vmatpush1.bf16.msra.mxu1 %v4483_v34  ;;  %v4566_v33 = vld [vmem:[#allocation13 + $0xec] ss:$16 sps:$4 sm:$0xff]  }
 0x269   :  { %4150 = vmatprep.subr.bf16.mxu0 %v4947_v11  ;;  %3005 = vmatprep.subr.bf16.mxu1 %v4488_v35 }
 0x26b   :  { %1868 = vmatmul.mubr.bf16.vlgmr.msra.gmra.mxu0 %v5073_v57  ;;  %v4457_v57 = vld [vmem:[#allocation11 + $0x330] ss:$20 sps:$4 sm:$0xff]  }
 0x26c   :  { %4151 = vmatpush3.bf16.msra.mxu0 %v4454_v36  ;;  %4166 = vmatprep.mubr.msk.bf16.mxu0 %vm4948_vm1, %v4947_v11 }
 0x26d   :  { %4152 = vmatprep.subr.bf16.mxu0 %v4947_v11  ;;  %3006 = vmatpush2.bf16.msra.mxu1 %v4486_v37 }
 0x26e   :  { %3007 = vmatprep.subr.bf16.mxu1 %v4491_v38  ;;  %v5098_v38 = vld [vmem:[%s5146_s6] sm:$0x1f] }
 0x270   :  { %4153 = vmatpush3.bf16.msra.mxu0 %v4455_v39  ;;  %v1107_v39 = vrot.slane %v5098_v38, %v5046_v61 }
 0x271   :  { %4154 = vmatprep.subr.bf16.mxu0 %v4947_v11  ;;  %3008 = vmatpush2.bf16.msra.mxu1 %v4489_v40  ;;  %v1111_v40 = vrot.slane %v5098_v38, %v5049_v63 }
 0x272   :  { %3009 = vmatprep.subr.bf16.mxu1 %v4494_v41 }
 0x274   :  { %4155 = vmatpush3.bf16.msra.mxu0 %v4456_v42 }
 0x275   :  { %4156 = vmatprep.subr.bf16.mxu0 %v4947_v11  ;;  %3010 = vmatpush2.bf16.msra.mxu1 %v4492_v43 }
 0x276   :  { %3011 = vmatprep.subr.bf16.mxu1 %v4497_v44 }
 0x278   :  { %4157 = vmatpush3.bf16.msra.mxu0 %v4457_v57 }
 0x279   :  { %4158 = vmatprep.subr.bf16.mxu0 %v4947_v11  ;;  %3012 = vmatpush2.bf16.msra.mxu1 %v4495_v45 }
 0x27a   :  { %3013 = vmatprep.subr.bf16.mxu1 %v4500_v46 }
 0x27c   :  { %4159 = vmatpush3.bf16.msra.mxu0 %v4458_v47 }
 0x27d   :  { %4160 = vmatprep.subr.bf16.mxu0 %v4947_v11  ;;  %3014 = vmatpush2.bf16.msra.mxu1 %v4498_v48 }
 0x27e   :  { %3015 = vmatprep.subr.bf16.mxu1 %v4503_v49 }
 0x280   :  { %4161 = vmatpush3.bf16.msra.mxu0 %v4459_v50 }
 0x281   :  { %4162 = vmatprep.subr.bf16.mxu0 %v4947_v11  ;;  %3016 = vmatpush2.bf16.msra.mxu1 %v4501_v51 }
 0x282   :  { %3017 = vmatprep.subr.bf16.mxu1 %v4506_v52 }
 0x284   :  { %4163 = vmatpush3.bf16.msra.mxu0 %v4460_v53 }
 0x285   :  { %4164 = vmatprep.subr.bf16.mxu0 %v4947_v11  ;;  %3018 = vmatpush2.bf16.msra.mxu1 %v4504_v54  ;;  %v4519_v11 = vld [vmem:[#allocation13 + $0x280] ss:$16 sps:$4 sm:$0xff]  }
 0x286   :  { %3019 = vmatprep.subr.bf16.mxu1 %v4509_v55  ;;  %v4555_v55 = vld [vmem:[#allocation13 + $0x4e0] ss:$16 sps:$4 sm:$0xff]  }
 0x288   :  { %4165 = vmatpush3.bf16.msra.mxu0 %v4461_v56 }
 0x289   :  { %3020 = vmatpush2.bf16.msra.mxu1 %v4507_v58  ;;  %3030 = vmatprep.subr.bf16.mxu0 %v4512_v59  ;;  %v4563_v58 = vld [vmem:[#allocation13 + $0x4c4] ss:$16 sps:$4 sm:$0xff]   ;;  %v4561_v59 = vld [vmem:[#allocation13 + $0x4c0] ss:$16 sps:$4 sm:$0xff]  }
 0x28a   :  { %3071 = vmatprep.subr.bf16.mxu1 %v4557_v20 }
 0x28b   :  { %4167 = vmatmul.mubr.bf16.vlgmr.msra.gmra.mxu0 %v5078_v30  ;;  %v4530_v30 = vld [vmem:[#allocation13 + $0x224] ss:$16 sps:$4 sm:$0xff]  }
 0x28c   :  { %3031 = vmatpush1.bf16.msra.mxu0 %v4510_v62  ;;  %v4569_v62 = vld [vmem:[#allocation13 + $0x4a4] ss:$16 sps:$4 sm:$0xff]  }
 0x28d   :  { %3032 = vmatprep.subr.bf16.mxu0 %v4515_v1  ;;  %v4567_v1 = vld [vmem:[#allocation13 + $0x4a0] ss:$16 sps:$4 sm:$0xff]  }
 0x290   :  { %3033 = vmatpush1.bf16.msra.mxu0 %v4513_v2  ;;  %v4575_v2 = vld [vmem:[#allocation13 + $0x484] ss:$16 sps:$4 sm:$0xff]  }
 0x291   :  { %3034 = vmatprep.subr.bf16.mxu0 %v4518_v3  ;;  %v4573_v3 = vld [vmem:[#allocation13 + $0x480] ss:$16 sps:$4 sm:$0xff]  }
 0x294   :  { %3035 = vmatpush1.bf16.msra.mxu0 %v4516_v4  ;;  %v4581_v4 = vld [vmem:[#allocation13 + $0x464] ss:$16 sps:$4 sm:$0xff]  }
 0x295   :  { %3036 = vmatprep.subr.bf16.mxu0 %v4521_v6  ;;  %v4579_v6 = vld [vmem:[#allocation13 + $0x460] ss:$16 sps:$4 sm:$0xff]  }
 0x298   :  { %3037 = vmatpush1.bf16.msra.mxu0 %v4519_v11  ;;  %v4587_v11 = vld [vmem:[#allocation13 + $0x444] ss:$16 sps:$4 sm:$0xff]  }
 0x299   :  { %3038 = vmatprep.subr.bf16.mxu0 %v4524_v7  ;;  %v4585_v7 = vld [vmem:[#allocation13 + $0x440] ss:$16 sps:$4 sm:$0xff]  }
 0x29c   :  { %3039 = vmatpush1.bf16.msra.mxu0 %v4522_v8  ;;  %v4593_v8 = vld [vmem:[#allocation13 + $0x424] ss:$16 sps:$4 sm:$0xff]  }
 0x29d   :  { %3040 = vmatprep.subr.bf16.mxu0 %v4527_v9  ;;  %v4591_v9 = vld [vmem:[#allocation13 + $0x420] ss:$16 sps:$4 sm:$0xff]  }
 0x2a0   :  { %3041 = vmatpush1.bf16.msra.mxu0 %v4525_v10 }
 0x2a1   :  { %3042 = vmatprep.subr.bf16.mxu0 %v4530_v30  ;;  %v4599_v30 = vld [vmem:[#allocation13 + $0x404] ss:$16 sps:$4 sm:$0xff]  }
 0x2a4   :  { %3043 = vmatpush1.bf16.msra.mxu0 %v4528_v12 }
 0x2a5   :  { %3044 = vmatprep.subr.bf16.mxu0 %v4533_v13  ;;  %v4597_v13 = vld [vmem:[#allocation13 + $0x400] ss:$16 sps:$4 sm:$0xff]  }
 0x2a8   :  { %3045 = vmatpush1.bf16.msra.mxu0 %v4531_v14 }
 0x2a9   :  { %3046 = vmatprep.subr.bf16.mxu0 %v4536_v15  ;;  %v4605_v15 = vld [vmem:[#allocation13 + $0x2ec] ss:$16 sps:$4 sm:$0xff]  }
 0x2ac   :  { %3047 = vmatpush2.bf16.msra.mxu0 %v4534_v16 }
 0x2ad   :  { %3048 = vmatprep.subr.bf16.mxu0 %v4539_v17  ;;  %v1118_v17 = vsub.s32 3, %v5043_v60 }
 0x2b0   :  { %3049 = vmatpush2.bf16.msra.mxu0 %v4537_v18  ;;  %v1115_v18 = vrot.slane %v5098_v38, %v5054_v5 }
 0x2b1   :  { %3050 = vmatprep.subr.bf16.mxu0 %v4542_v19  ;;  %v1119_v19 = vrot.slane %v5098_v38, %v1118_v17 }
 0x2b4   :  { %3051 = vmatpush2.bf16.msra.mxu0 %v4540_v21 }
 0x2b5   :  { %3052 = vmatprep.subr.bf16.mxu0 %v4545_v22 }
 0x2b8   :  { %3053 = vmatpush2.bf16.msra.mxu0 %v4543_v23 }
 0x2b9   :  { %3054 = vmatprep.subr.bf16.mxu0 %v4548_v24 }
 0x2bc   :  { %3055 = vmatpush2.bf16.msra.mxu0 %v4546_v25 }
 0x2bd   :  { %3056 = vmatprep.subr.bf16.mxu0 %v4551_v26 }
 0x2c0   :  { %3057 = vmatpush2.bf16.msra.mxu0 %v4549_v27 }
 0x2c1   :  { %3058 = vmatprep.subr.bf16.mxu0 %v4554_v28 }
 0x2c4   :  { %3059 = vmatpush2.bf16.msra.mxu0 %v4552_v29 }
 0x2c5   :  { %3060 = vmatprep.subr.bf16.mxu0 %v4560_v31 }
 0x2c8   :  { %v1787_v34 = vpop.f32.mrf.mxu1  ;;  %3061 = vmatpush2.bf16.msra.mxu0 %v4558_v32  ;;  %v4564_v32 = vld [vmem:[#allocation13 + $0xe8] ss:$16 sps:$4 sm:$0xff]  }
 0x2c9   :  { %3112 = vmatprep.subr.bf16.mxu0 %v4566_v33  ;;  %v1788_v41 = vadd.f32 %v1787_v34, %v1107_v39  ;;  %v4572_v34 = vld [vmem:[#allocation13 + $0xcc] ss:$16 sps:$4 sm:$0xff]  }
 0x2ca   :  { %v1789_v35 = vpop.f32.mrf.mxu1  ;;  %v4584_v39 = vld [vmem:[#allocation13 + $0x8c] ss:$16 sps:$4 sm:$0xff]  }
 0x2cb   :  { %v1790_v44 = vadd.f32 %v1789_v35, %v1111_v40  ;;  %v4570_v35 = vld [vmem:[#allocation13 + $0xc8] ss:$16 sps:$4 sm:$0xff]  }
 0x2cc   :  { %v1791_v36 = vpop.f32.mrf.mxu1  ;;  %v4582_v40 = vld [vmem:[#allocation13 + $0x88] ss:$16 sps:$4 sm:$0xff]  }
 0x2cd   :  { %v4578_v36 = vld [vmem:[#allocation13 + $0xac] ss:$16 sps:$4 sm:$0xff]  }
 0x2ce   :  { %v1792_v37 = vpop.f32.mrf.mxu1 }
 0x2cf   :  { %v4576_v37 = vld [vmem:[#allocation13 + $0xa8] ss:$16 sps:$4 sm:$0xff]  }
 0x2eb   :  { %v1828_v42 = vpop.f32.mrf.mxu0  ;;  %v1910_v43 = vpop.f32.mrf.mxu1 }
 0x2ec   :  { %v1829_v57 = vadd.f32 %v1828_v42, %v1788_v41  ;;  %v4590_v41 = vld [vmem:[#allocation13 + $0x6c] ss:$16 sps:$4 sm:$0xff]   ;;  %v1122_v42 = vsub.s32 4, %v5043_v60 }
 0x2ed   :  { %v1830_v45 = vpop.f32.mrf.mxu0  ;;  %v1912_v46 = vpop.f32.mrf.mxu1 }
 0x2ee   :  { %v1831_v47 = vadd.f32 %v1830_v45, %v1790_v44  ;;  %v1997_v48 = vmax.f32 %v1829_v57, 0.0  ;;  %v4596_v44 = vld [vmem:[#allocation13 + $0x4c] ss:$16 sps:$4 sm:$0xff]   ;;  %v1123_v45 = vrot.slane %v5098_v38, %v1122_v42 }
 0x2ef   :  { %v1832_v49 = vpop.f32.mrf.mxu0  ;;  %v1914_v50 = vpop.f32.mrf.mxu1  ;;  %v4611_v38 = vld [vmem:[#allocation13 + $0x2cc] ss:$16 sps:$4 sm:$0xff]  }
 0x2f0   :  { %v1998_v51 = vmax.f32 %v1831_v47, 0.0  ;;  %v5104_v56 = vpack.c.bf16 %v1997_v48, %v1997_v48  ;;  %v4602_v47 = vld [vmem:[#allocation13 + $0x2c] ss:$16 sps:$4 sm:$0xff]  }
 0x2f1   :  { %v1833_v52 = vpop.f32.mrf.mxu0  ;;  %v1915_v53 = vpop.f32.mrf.mxu1  ;;  %v4668_v42 = vld [vmem:[#allocation13 + $0x4cc] ss:$16 sps:$4 sm:$0xff]  }
 0x2f2   :  { %v2003_v54 = vpack.c.bf16 %v1998_v51, %v1998_v51  ;;  %v4600_v51 = vld [vmem:[#allocation13 + $0x28] ss:$16 sps:$4 sm:$0xff]   ;;  %v4608_v53 = vld [vmem:[#allocation13 + $0xc] ss:$16 sps:$4 sm:$0xff]  }
 0x2f4   :  { %3021 = vmatprep.mubr.bf16.mxu1 %v2003_v54 }
 0x2f5   :  { %3022 = vmatmul.mubr.bf16.vlgmr.msra.gmra.mxu1 %v5104_v56 }
 0x2f6   :  { %3072 = vmatpush1.bf16.msra.mxu1 %v4555_v55  ;;  %3103 = vmatprep.mubr.bf16.mxu1 %v4946_v0 }
 0x2f7   :  { %3073 = vmatprep.subr.bf16.mxu1 %v4563_v58  ;;  %v4603_v58 = vld [vmem:[#allocation13 + $0x2e8] ss:$16 sps:$4 sm:$0xff]  }
 0x2fa   :  { %3074 = vmatpush1.bf16.msra.mxu1 %v4561_v59 }
 0x2fb   :  { %3075 = vmatprep.subr.bf16.mxu1 %v4569_v62  ;;  %v4606_v62 = vld [vmem:[#allocation13 + $0x8] ss:$16 sps:$4 sm:$0xff]  }
 0x2fe   :  { %3076 = vmatpush1.bf16.msra.mxu1 %v4567_v1 }
 0x2ff   :  { %3077 = vmatprep.subr.bf16.mxu1 %v4575_v2  ;;  %v4614_v2 = vld [vmem:[#allocation13 + $0x1ec] ss:$16 sps:$4 sm:$0xff]  }
 0x302   :  { %3078 = vmatpush1.bf16.msra.mxu1 %v4573_v3  ;;  %v4609_v3 = vld [vmem:[#allocation13 + $0x2c8] ss:$16 sps:$4 sm:$0xff]  }
 0x303   :  { %3079 = vmatprep.subr.bf16.mxu1 %v4581_v4  ;;  %v4612_v4 = vld [vmem:[#allocation13 + $0x1e8] ss:$16 sps:$4 sm:$0xff]  }
 0x306   :  { %3080 = vmatpush1.bf16.msra.mxu1 %v4579_v6  ;;  %v4617_v6 = vld [vmem:[#allocation13 + $0x2ac] ss:$16 sps:$4 sm:$0xff]  }
 0x307   :  { %3081 = vmatprep.subr.bf16.mxu1 %v4587_v11  ;;  %v4620_v11 = vld [vmem:[#allocation13 + $0x1cc] ss:$16 sps:$4 sm:$0xff]  }
 0x30a   :  { %3082 = vmatpush1.bf16.msra.mxu1 %v4585_v7  ;;  %v4615_v7 = vld [vmem:[#allocation13 + $0x2a8] ss:$16 sps:$4 sm:$0xff]  }
 0x30b   :  { %v4063_v10 = vpop.f32.mrf.mxu1  ;;  %3083 = vmatprep.subr.bf16.mxu1 %v4593_v8  ;;  %v4618_v8 = vld [vmem:[#allocation13 + $0x1c8] ss:$16 sps:$4 sm:$0xff]  }
 0x30d   :  { %v4064_v12 = vpop.f32.mrf.mxu1 }
 0x30e   :  { %3084 = vmatpush1.bf16.msra.mxu1 %v4591_v9  ;;  %v4065_v57 = vadd.f32 %v4064_v12, %v4063_v10  ;;  %v4623_v9 = vld [vmem:[#allocation13 + $0x28c] ss:$16 sps:$4 sm:$0xff]   ;;  %v4624_v12 = vld [vmem:[#allocation13 + $0x1a8] ss:$16 sps:$4 sm:$0xff]  }
 0x30f   :  { %v4066_v14 = vpop.f32.mrf.mxu1  ;;  %3085 = vmatprep.subr.bf16.mxu1 %v4599_v30  ;;  %v4626_v10 = vld [vmem:[#allocation13 + $0x1ac] ss:$16 sps:$4 sm:$0xff]   ;;  %v4621_v30 = vld [vmem:[#allocation13 + $0x288] ss:$16 sps:$4 sm:$0xff]  }
 0x310   :  { %v1952_v48 = vadd.f32 %v4065_v57, %v1123_v45  ;;  %v4632_v14 = vld [vmem:[#allocation13 + $0x18c] ss:$16 sps:$4 sm:$0xff]  }
 0x311   :  { %v4067_v16 = vpop.f32.mrf.mxu1  ;;  %v4671_v57 = vld [vmem:[#allocation13 + $0x38c] ss:$16 sps:$4 sm:$0xff]  }
 0x312   :  { %3086 = vmatpush1.bf16.msra.mxu1 %v4597_v13  ;;  %v4629_v13 = vld [vmem:[#allocation13 + $0x26c] ss:$16 sps:$4 sm:$0xff]   ;;  %v4630_v16 = vld [vmem:[#allocation13 + $0x188] ss:$16 sps:$4 sm:$0xff]  }
 0x313   :  { %3153 = vmatprep.subr.bf16.mxu1 %v4605_v15  ;;  %v4627_v15 = vld [vmem:[#allocation13 + $0x268] ss:$16 sps:$4 sm:$0xff]   ;;  %v4674_v45 = vld [vmem:[#allocation13 + $0x4ac] ss:$16 sps:$4 sm:$0xff]  }
 0x32b   :  { %v1869_v20 = vpop.f32.mrf.mxu0 }
 0x32c   :  { %v1870_v21 = vadd.f32 %v1869_v20, %v1115_v18  ;;  %v4635_v18 = vld [vmem:[#allocation13 + $0x24c] ss:$16 sps:$4 sm:$0xff]   ;;  %v4633_v20 = vld [vmem:[#allocation13 + $0x248] ss:$16 sps:$4 sm:$0xff]  }
 0x32d   :  { %v1871_v22 = vpop.f32.mrf.mxu0 }
 0x32e   :  { %v1911_v23 = vadd.f32 %v1910_v43, %v1870_v21  ;;  %v1872_v24 = vadd.f32 %v1871_v22, %v1119_v19  ;;  %v4588_v43 = vld [vmem:[#allocation13 + $0x68] ss:$16 sps:$4 sm:$0xff]   ;;  %v4638_v19 = vld [vmem:[#allocation13 + $0x16c] ss:$16 sps:$4 sm:$0xff]  }
 0x32f   :  { %v1873_v25 = vpop.f32.mrf.mxu0  ;;  %v4636_v21 = vld [vmem:[#allocation13 + $0x168] ss:$16 sps:$4 sm:$0xff]   ;;  %v4641_v22 = vld [vmem:[#allocation13 + $0x22c] ss:$16 sps:$4 sm:$0xff]  }
 0x330   :  { %v1913_v26 = vadd.f32 %v1912_v46, %v1872_v24  ;;  %v1999_v27 = vmax.f32 %v1911_v23, 0.0  ;;  %v4594_v46 = vld [vmem:[#allocation13 + $0x48] ss:$16 sps:$4 sm:$0xff]   ;;  %v4644_v23 = vld [vmem:[#allocation13 + $0x14c] ss:$16 sps:$4 sm:$0xff]  }
 0x331   :  { %v1874_v28 = vpop.f32.mrf.mxu0  ;;  %v4639_v24 = vld [vmem:[#allocation13 + $0x228] ss:$16 sps:$4 sm:$0xff]  }
 0x332   :  { %v2000_v29 = vmax.f32 %v1913_v26, 0.0  ;;  %v5114_v33 = vpack.c.bf16 %v1999_v27, %v1999_v27  ;;  %v4642_v25 = vld [vmem:[#allocation13 + $0x148] ss:$16 sps:$4 sm:$0xff]   ;;  %v4647_v26 = vld [vmem:[#allocation13 + $0x20c] ss:$16 sps:$4 sm:$0xff]  }
 0x333   :  { %v4650_v27 = vld [vmem:[#allocation13 + $0x12c] ss:$16 sps:$4 sm:$0xff]   ;;  %v4645_v28 = vld [vmem:[#allocation13 + $0x208] ss:$16 sps:$4 sm:$0xff]  }
 0x334   :  { %v2005_v31 = vpack.c.bf16 %v2000_v29, %v2000_v29  ;;  %v4648_v29 = vld [vmem:[#allocation13 + $0x128] ss:$16 sps:$4 sm:$0xff]  }
 0x336   :  { %3062 = vmatprep.mubr.bf16.mxu0 %v2005_v31 }
 0x337   :  { %3063 = vmatmul.mubr.bf16.vlgmr.msra.gmra.mxu0 %v5114_v33 }
 0x338   :  { %3113 = vmatpush1.bf16.msra.mxu0 %v4564_v32  ;;  %3144 = vmatprep.mubr.bf16.mxu0 %v2003_v54  ;;  %v4656_v32 = vld [vmem:[#allocation13 + $0x10c] ss:$16 sps:$4 sm:$0xff]  }
 0x339   :  { %3114 = vmatprep.subr.bf16.mxu0 %v4572_v34  ;;  %v4651_v34 = vld [vmem:[#allocation13 + $0x3e8] ss:$16 sps:$4 sm:$0xff]  }
 0x33c   :  { %3115 = vmatpush1.bf16.msra.mxu0 %v4570_v35  ;;  %v4654_v35 = vld [vmem:[#allocation13 + $0x108] ss:$16 sps:$4 sm:$0xff]  }
 0x33d   :  { %3116 = vmatprep.subr.bf16.mxu0 %v4578_v36  ;;  %v4659_v36 = vld [vmem:[#allocation13 + $0x3cc] ss:$16 sps:$4 sm:$0xff]  }
 0x340   :  { %3117 = vmatpush1.bf16.msra.mxu0 %v4576_v37  ;;  %v4662_v37 = vld [vmem:[#allocation13 + $0x4ec] ss:$16 sps:$4 sm:$0xff]  }
 0x341   :  { %3118 = vmatprep.subr.bf16.mxu0 %v4584_v39  ;;  %v4657_v39 = vld [vmem:[#allocation13 + $0x3c8] ss:$16 sps:$4 sm:$0xff]  }
 0x344   :  { %3119 = vmatpush1.bf16.msra.mxu0 %v4582_v40  ;;  %v4660_v40 = vld [vmem:[#allocation13 + $0x4e8] ss:$16 sps:$4 sm:$0xff]  }
 0x345   :  { %3120 = vmatprep.subr.bf16.mxu0 %v4590_v41  ;;  %v4665_v41 = vld [vmem:[#allocation13 + $0x3ac] ss:$16 sps:$4 sm:$0xff]  }
 0x348   :  { %3121 = vmatpush1.bf16.msra.mxu0 %v4588_v43  ;;  %v4663_v43 = vld [vmem:[#allocation13 + $0x3a8] ss:$16 sps:$4 sm:$0xff]  }
 0x349   :  { %3122 = vmatprep.subr.bf16.mxu0 %v4596_v44  ;;  %v4666_v44 = vld [vmem:[#allocation13 + $0x4c8] ss:$16 sps:$4 sm:$0xff]  }
 0x34b   :  { %v1991_v49 = vpop.f32.mrf.mxu0 }
 0x34c   :  { %v1992_v50 = vadd.f32 %v1991_v49, %v1952_v48  ;;  %3123 = vmatpush1.bf16.msra.mxu0 %v4594_v46  ;;  %v4669_v46 = vld [vmem:[#allocation13 + $0x388] ss:$16 sps:$4 sm:$0xff]   ;;  %v4677_v48 = vld [vmem:[#allocation13 + $0x36c] ss:$16 sps:$4 sm:$0xff]  }
 0x34d   :  { %v4168_v52 = vpop.f32.mrf.mxu0  ;;  %3124 = vmatprep.subr.bf16.mxu0 %v4602_v47  ;;  %v4672_v47 = vld [vmem:[#allocation13 + $0x4a8] ss:$16 sps:$4 sm:$0xff]   ;;  %v4680_v49 = vld [vmem:[#allocation13 + $0x48c] ss:$16 sps:$4 sm:$0xff]  }
 0x34e   :  { %v2001_v54 = vmax.f32 %v1992_v50, 0.0  ;;  %v4678_v50 = vld [vmem:[#allocation13 + $0x488] ss:$16 sps:$4 sm:$0xff]   ;;  %v4686_v52 = vld [vmem:[#allocation13 + $0x46c] ss:$16 sps:$4 sm:$0xff]  }
 0x34f   :  { %v1994_v55 = vpop.f32.mrf.mxu0 }
 0x350   :  { %v5119_v59 = vpack.c.bf16 %v2001_v54, %v2001_v54  ;;  %3125 = vmatpush1.bf16.msra.mxu0 %v4600_v51  ;;  %v4683_v51 = vld [vmem:[#allocation13 + $0x34c] ss:$16 sps:$4 sm:$0xff]  }
 0x351   :  { %v4169_v1 = vpop.f32.mrf.mxu0  ;;  %3126 = vmatprep.subr.bf16.mxu0 %v4608_v53  ;;  %v4681_v53 = vld [vmem:[#allocation13 + $0x348] ss:$16 sps:$4 sm:$0xff]   ;;  %v4689_v54 = vld [vmem:[#allocation13 + $0x32c] ss:$16 sps:$4 sm:$0xff]  }
 0x352   :  { %3104 = vmatmul.mubr.bf16.vlgmr.msra.gmra.mxu1 %v5119_v59  ;;  %v4692_v55 = vld [vmem:[#allocation13 + $0x44c] ss:$16 sps:$4 sm:$0xff]  }
 0x353   :  { %3154 = vmatpush1.bf16.msra.mxu1 %v4603_v58  ;;  %3185 = vmatprep.mubr.bf16.mxu1 %v2005_v31  ;;  %v4653_v31 = vld [vmem:[#allocation13 + $0x3ec] ss:$16 sps:$4 sm:$0xff]   ;;  %v4687_v58 = vld [vmem:[#allocation13 + $0x328] ss:$16 sps:$4 sm:$0xff]  }
 0x354   :  { %3127 = vmatpush1.bf16.msra.mxu0 %v4606_v62  ;;  %3155 = vmatprep.subr.bf16.mxu1 %v4611_v38  ;;  %v4690_v62 = vld [vmem:[#allocation13 + $0x448] ss:$16 sps:$4 sm:$0xff]   ;;  %v4695_v38 = vld [vmem:[#allocation13 + $0x30c] ss:$16 sps:$4 sm:$0xff]  }
 0x355   :  { %3128 = vmatprep.subr.bf16.mxu0 %v4614_v2  ;;  %v4698_v1 = vld [vmem:[#allocation13 + $0x42c] ss:$16 sps:$4 sm:$0xff]   ;;  %v4693_v2 = vld [vmem:[#allocation13 + $0x308] ss:$16 sps:$4 sm:$0xff]  }
 0x357   :  { %3156 = vmatpush1.bf16.msra.mxu1 %v4609_v3  ;;  %v4696_v3 = vld [vmem:[#allocation13 + $0x428] ss:$16 sps:$4 sm:$0xff]  }
 0x358   :  { %3129 = vmatpush2.bf16.msra.mxu0 %v4612_v4  ;;  %3157 = vmatprep.subr.bf16.mxu1 %v4617_v6  ;;  %v4702_v4 = vld [vmem:[#allocation14 + $0x78] sm:$0xff]  }
 0x359   :  { %3130 = vmatprep.subr.bf16.mxu0 %v4620_v11  ;;  %v4701_v6 = vld [vmem:[#allocation13 + $0x40c] ss:$16 sps:$4 sm:$0xff]  }
 0x35a   :  { %v4703_v11 = vld [vmem:[#allocation14 + $0x38] sm:$0xff]  }
 0x35b   :  { %3158 = vmatpush1.bf16.msra.mxu1 %v4615_v7  ;;  %v4699_v7 = vld [vmem:[#allocation13 + $0x408] ss:$16 sps:$4 sm:$0xff]  }
 0x35c   :  { %3131 = vmatpush2.bf16.msra.mxu0 %v4618_v8  ;;  %3159 = vmatprep.subr.bf16.mxu1 %v4623_v9  ;;  %v4704_v8 = vld [vmem:[#allocation14 + $0x70] sm:$0xff]  }
 0x35d   :  { %3132 = vmatprep.subr.bf16.mxu0 %v4626_v10  ;;  %v4705_v9 = vld [vmem:[#allocation14 + $0x30] sm:$0xff]   ;;  %v4706_v10 = vld [vmem:[#allocation14 + $0x68] sm:$0xff]  }
 0x35f   :  { %3160 = vmatpush1.bf16.msra.mxu1 %v4621_v30  ;;  %v4707_v30 = vld [vmem:[#allocation14 + $0x28] sm:$0xff]  }
 0x360   :  { %3133 = vmatpush2.bf16.msra.mxu0 %v4624_v12  ;;  %3161 = vmatprep.subr.bf16.mxu1 %v4629_v13  ;;  %v4708_v12 = vld [vmem:[#allocation14 + $0x60] sm:$0xff]  }
 0x361   :  { %3134 = vmatprep.subr.bf16.mxu0 %v4632_v14  ;;  %v4709_v13 = vld [vmem:[#allocation14 + $0x20] sm:$0xff]   ;;  %v4710_v14 = vld [vmem:[#allocation14 + $0x58] sm:$0xff]  }
 0x363   :  { %3162 = vmatpush1.bf16.msra.mxu1 %v4627_v15  ;;  %v4711_v15 = vld [vmem:[#allocation14 + $0x18] sm:$0xff]  }
 0x364   :  { %3135 = vmatpush2.bf16.msra.mxu0 %v4630_v16  ;;  %3163 = vmatprep.subr.bf16.mxu1 %v4635_v18  ;;  %v4712_v16 = vld [vmem:[#allocation14 + $0x50] sm:$0xff]   ;;  %v4714_v18 = vld [vmem:[#allocation14 + $0x48] sm:$0xff]  }
 0x365   :  { %3136 = vmatprep.subr.bf16.mxu0 %v4638_v19  ;;  %v4715_v19 = vld [vmem:[#allocation14 + $0x8] sm:$0xff]  }
 0x367   :  { %3164 = vmatpush1.bf16.msra.mxu1 %v4633_v20  ;;  %v4717_v20 = vld [vmem:[#allocation14] sm:$0xff]  }
 0x368   :  { %3137 = vmatpush2.bf16.msra.mxu0 %v4636_v21  ;;  %3165 = vmatprep.subr.bf16.mxu1 %v4641_v22 }
 0x369   :  { %3138 = vmatprep.subr.bf16.mxu0 %v4644_v23 }
 0x36b   :  { %3166 = vmatpush1.bf16.msra.mxu1 %v4639_v24 }
 0x36c   :  { %3139 = vmatpush2.bf16.msra.mxu0 %v4642_v25  ;;  %3167 = vmatprep.subr.bf16.mxu1 %v4647_v26  ;;  %v4718_v25 = vld [vmem:[#allocation14 + $0xf8] sm:$0xff]  }
 0x36d   :  { %3140 = vmatprep.subr.bf16.mxu0 %v4650_v27  ;;  %v4719_v26 = vld [vmem:[#allocation14 + $0xb8] sm:$0xff]   ;;  %v4720_v27 = vld [vmem:[#allocation14 + $0xf0] sm:$0xff]  }
 0x36f   :  { %3168 = vmatpush1.bf16.msra.mxu1 %v4645_v28  ;;  %v4721_v28 = vld [vmem:[#allocation14 + $0xb0] sm:$0xff]  }
 0x370   :  { %3141 = vmatpush2.bf16.msra.mxu0 %v4648_v29  ;;  %3169 = vmatprep.subr.bf16.mxu1 %v4653_v31  ;;  %v4722_v29 = vld [vmem:[#allocation14 + $0xe8] sm:$0xff]  }
 0x371   :  { %3142 = vmatprep.subr.bf16.mxu0 %v4656_v32  ;;  %v4723_v31 = vld [vmem:[#allocation14 + $0xa8] sm:$0xff]   ;;  %v4724_v32 = vld [vmem:[#allocation14 + $0xe0] sm:$0xff]  }
 0x373   :  { %3170 = vmatpush2.bf16.msra.mxu1 %v4651_v34  ;;  %v4725_v34 = vld [vmem:[#allocation14 + $0xa0] sm:$0xff]  }
 0x374   :  { %3143 = vmatpush2.bf16.msra.mxu0 %v4654_v35  ;;  %3171 = vmatprep.subr.bf16.mxu1 %v4659_v36  ;;  %v4726_v35 = vld [vmem:[#allocation14 + $0xd8] sm:$0xff]  }
 0x375   :  { %3194 = vmatprep.subr.bf16.mxu0 %v4662_v37  ;;  %v4727_v36 = vld [vmem:[#allocation14 + $0x98] sm:$0xff]   ;;  %v4728_v37 = vld [vmem:[#allocation14 + $0xd0] sm:$0xff]  }
 0x377   :  { %3145 = vmatmul.mubr.bf16.vlgmr.msra.gmra.mxu0 %v5104_v56  ;;  %3172 = vmatpush2.bf16.msra.mxu1 %v4657_v39  ;;  %v4675_v56 = vld [vmem:[#allocation13 + $0x368] ss:$16 sps:$4 sm:$0xff]   ;;  %v4729_v39 = vld [vmem:[#allocation14 + $0x90] sm:$0xff]  }
 0x378   :  { %3195 = vmatpush1.bf16.msra.mxu0 %v4660_v40  ;;  %3173 = vmatprep.subr.bf16.mxu1 %v4665_v41  ;;  %v4730_v40 = vld [vmem:[#allocation14 + $0xc8] sm:$0xff]  }
 0x379   :  { %3196 = vmatprep.subr.bf16.mxu0 %v4668_v42  ;;  %3226 = vmatprep.mubr.bf16.mxu0 %v4946_v0  ;;  %v4684_v0 = vld [vmem:[#allocation13 + $0x468] ss:$16 sps:$4 sm:$0xff]   ;;  %v4732_v42 = vld [vmem:[#allocation14 + $0xc0] sm:$0xff]  }
 0x37a   :  { %v4731_v41 = vld [vmem:[#allocation14 + $0x88] sm:$0xff]  }
 0x37b   :  { %3174 = vmatpush2.bf16.msra.mxu1 %v4663_v43  ;;  %v4733_v43 = vld [vmem:[#allocation14 + $0x80] sm:$0xff]  }
 0x37c   :  { %3197 = vmatpush1.bf16.msra.mxu0 %v4666_v44  ;;  %3175 = vmatprep.subr.bf16.mxu1 %v4671_v57 }
 0x37d   :  { %3198 = vmatprep.subr.bf16.mxu0 %v4674_v45 }
 0x37f   :  { %3176 = vmatpush2.bf16.msra.mxu1 %v4669_v46 }
 0x380   :  { %3199 = vmatpush1.bf16.msra.mxu0 %v4672_v47  ;;  %3177 = vmatprep.subr.bf16.mxu1 %v4677_v48  ;;  %v2167_v47 = vld [vmem:[%s5148_s8] sm:$0xf] }
 0x381   :  { %3200 = vmatprep.subr.bf16.mxu0 %v4680_v49  ;;  %v2172_v48 = vrot.slane %v2167_v47, %v5046_v61  ;;  %v2176_v49 = vrot.slane %v2167_v47, %v5049_v63 }
 0x383   :  { %3178 = vmatpush2.bf16.msra.mxu1 %v4675_v56 }
 0x384   :  { %3201 = vmatpush1.bf16.msra.mxu0 %v4678_v50  ;;  %3179 = vmatprep.subr.bf16.mxu1 %v4683_v51 }
 0x385   :  { %3202 = vmatprep.subr.bf16.mxu0 %v4686_v52 }
 0x387   :  { %3180 = vmatpush2.bf16.msra.mxu1 %v4681_v53 }
 0x388   :  { %3203 = vmatpush1.bf16.msra.mxu0 %v4684_v0  ;;  %3181 = vmatprep.subr.bf16.mxu1 %v4689_v54 }
 0x389   :  { %3204 = vmatprep.subr.bf16.mxu0 %v4692_v55 }
 0x38b   :  { %3182 = vmatpush2.bf16.msra.mxu1 %v4687_v58 }
 0x38c   :  { %3205 = vmatpush1.bf16.msra.mxu0 %v4690_v62  ;;  %3183 = vmatprep.subr.bf16.mxu1 %v4695_v38 }
 0x38d   :  { %3206 = vmatprep.subr.bf16.mxu0 %v4698_v1 }
 0x38f   :  { %3184 = vmatpush2.bf16.msra.mxu1 %v4693_v2 }
 0x390   :  { %3207 = vmatpush1.bf16.msra.mxu0 %v4696_v3  ;;  %4078 = vmatprep.subr.bf16.mxu1 %v4702_v4 }
 0x391   :  { %3208 = vmatprep.subr.bf16.mxu0 %v4701_v6 }
 0x392   :  { %3186 = vmatmul.mubr.bf16.vlgmr.msra.gmra.mxu1 %v5114_v33  ;;  %v4713_v33 = vld [vmem:[#allocation14 + $0x10] sm:$0xff]  }
 0x393   :  { %4079 = vmatpush3.bf16.msra.mxu1 %v4703_v11  ;;  %v2180_v11 = vrot.slane %v2167_v47, %v5054_v5 }
 0x394   :  { %3209 = vmatpush1.bf16.msra.mxu0 %v4699_v7  ;;  %4080 = vmatprep.subr.bf16.mxu1 %v4704_v8  ;;  %v2184_v7 = vrot.slane %v2167_v47, %v1118_v17 }
 0x395   :  { %4100 = vmatprep.subr.bf16.mxu0 %v4718_v25 }
 0x397   :  { %3227 = vmatmul.mubr.bf16.vlgmr.msra.gmra.mxu0 %v5119_v59  ;;  %4081 = vmatpush3.bf16.msra.mxu1 %v4705_v9  ;;  %v4716_v59 = vld [vmem:[#allocation14 + $0x40] sm:$0xff]  }
 0x398   :  { %4082 = vmatprep.subr.bf16.mxu1 %v4706_v10  ;;  %4101 = vmatpush3.bf16.msra.mxu0 %v4719_v26 }
 0x399   :  { %4102 = vmatprep.subr.bf16.mxu0 %v4720_v27  ;;  %v3980_v27 = vld [vmem:[%s5150_s10] ss:$0 sm:$0xff]  ;;  %s4898_s10 = scalar_lea.vmem %s3608_s23, 128 }
 0x39a   :  { %p4899_p12 = scmp.ne.s32.totalorder %s3608_s23, %s4898_s10  ;;  %p4904_p0 = scmp.lt.s32.totalorder %s4898_s10, %s4898_s10 }
 0x39b   :  { %4083 = vmatpush3.bf16.msra.mxu1 %v4707_v30 }
 0x39c   :  { %4084 = vmatprep.subr.bf16.mxu1 %v4708_v12  ;;  %4103 = vmatpush3.bf16.msra.mxu0 %v4721_v28  ;;  %p4905_p1 = por %p4904_p0, %p4903_p13 }
 0x39d   :  { %4104 = vmatprep.subr.bf16.mxu0 %v4722_v29 }
 0x39e   :  { %p4906_p2 = pnand %p4905_p1, %p4899_p12 }
 0x39f   :  { %4085 = vmatpush3.bf16.msra.mxu1 %v4709_v13 }
 0x3a0   :  { %4086 = vmatprep.subr.bf16.mxu1 %v4710_v14  ;;  %4105 = vmatpush3.bf16.msra.mxu0 %v4723_v31 }
 0x3a1   :  { %4106 = vmatprep.subr.bf16.mxu0 %v4724_v32 }
 0x3a3   :  { %4087 = vmatpush3.bf16.msra.mxu1 %v4711_v15 }
 0x3a4   :  { %4088 = vmatprep.subr.bf16.mxu1 %v4712_v16  ;;  %4107 = vmatpush3.bf16.msra.mxu0 %v4725_v34 }
 0x3a5   :  { %4108 = vmatprep.subr.bf16.mxu0 %v4726_v35 }
 0x3a7   :  { %4089 = vmatpush3.bf16.msra.mxu1 %v4713_v33 }
 0x3a8   :  { %4090 = vmatprep.subr.bf16.mxu1 %v4714_v18  ;;  %4109 = vmatpush3.bf16.msra.mxu0 %v4727_v36 }
 0x3a9   :  { %4110 = vmatprep.subr.bf16.mxu0 %v4728_v37 }
 0x3ab   :  { %4091 = vmatpush3.bf16.msra.mxu1 %v4715_v19 }
 0x3ac   :  { %4092 = vmatprep.subr.bf16.mxu1 %v4716_v59  ;;  %4111 = vmatpush3.bf16.msra.mxu0 %v4729_v39 }
 0x3ad   :  { %4112 = vmatprep.subr.bf16.mxu0 %v4730_v40 }
 0x3af   :  { %4093 = vmatpush3.bf16.msra.mxu1 %v4717_v20 }
 0x3b0   :  { %4113 = vmatpush3.bf16.msra.mxu0 %v4731_v41 }
 0x3b1   :  { %4114 = vmatprep.subr.bf16.mxu0 %v4732_v42 }
 0x3b4   :  { %4115 = vmatpush3.bf16.msra.mxu0 %v4733_v43 }
 0x3b5   :  { %v3023_v21 = vpop.f32.mrf.mxu1 }
 0x3b6   :  { %v3024_v56 = vadd.f32 %v3023_v21, %v2172_v48 }
 0x3b7   :  { %v3025_v22 = vpop.f32.mrf.mxu1 }
 0x3b8   :  { %v3026_v50 = vadd.f32 %v3025_v22, %v2176_v49 }
 0x3b9   :  { %v3027_v23 = vpop.f32.mrf.mxu1 }
 0x3bb   :  { %v3028_v24 = vpop.f32.mrf.mxu1 }
 0x3f7   :  { %v3064_v44 = vpop.f32.mrf.mxu0 }
 0x3f8   :  { %v3065_v51 = vadd.f32 %v3064_v44, %v3024_v56 }
 0x3f9   :  { %v3066_v57 = vpop.f32.mrf.mxu0 }
 0x3fa   :  { %v3067_v53 = vadd.f32 %v3066_v57, %v3026_v50 }
 0x3fb   :  { %v3068_v45 = vpop.f32.mrf.mxu0 }
 0x3fd   :  { %v3069_v46 = vpop.f32.mrf.mxu0 }
 0x412   :  { %v3105_v52 = vpop.f32.mrf.mxu1 }
 0x413   :  { %v3106_v0 = vadd.f32 %v3105_v52, %v3065_v51 }
 0x414   :  { %v3107_v54 = vpop.f32.mrf.mxu1 }
 0x415   :  { %v3108_v55 = vadd.f32 %v3107_v54, %v3067_v53  ;;  %v3235_v58 = vmax.f32 %v3106_v0, 0.0 }
 0x416   :  { %v3109_v62 = vpop.f32.mrf.mxu1 }
 0x417   :  { %v3236_v38 = vmax.f32 %v3108_v55, 0.0  ;;  %v3239_v3 = vpack.c.bf16 %v3235_v58, %v3235_v58 }
 0x418   :  { %v3110_v1 = vpop.f32.mrf.mxu1 }
 0x419   :  { %v3240_v2 = vpack.c.bf16 %v3236_v38, %v3236_v38 }
 0x41b   :  { %3538 = vmatprep.mubr.bf16.mxu1 %v3240_v2 }
 0x41c   :  { %3539 = vmatmul.mubr.bf16.vlgmr.msra.gmra.mxu1 %v3239_v3 }
 0x437   :  { %v3146_v4 = vpop.f32.mrf.mxu0 }
 0x438   :  { %v3147_v9 = vadd.f32 %v3146_v4, %v2180_v11 }
 0x439   :  { %v3148_v61 = vpop.f32.mrf.mxu0 }
 0x43a   :  { %v3149_v30 = vadd.f32 %v3148_v61, %v2184_v7 }
 0x43b   :  { %v3150_v6 = vpop.f32.mrf.mxu0 }
 0x43d   :  { %v3151_v63 = vpop.f32.mrf.mxu0 }
 0x452   :  { %v3187_v8 = vpop.f32.mrf.mxu1 }
 0x453   :  { %v3188_v12 = vadd.f32 %v3187_v8, %v3147_v9 }
 0x454   :  { %v3189_v10 = vpop.f32.mrf.mxu1 }
 0x455   :  { %v3190_v15 = vadd.f32 %v3189_v10, %v3149_v30 }
 0x456   :  { %v3191_v13 = vpop.f32.mrf.mxu1 }
 0x457   :  { %v3228_v14 = vpop.f32.mrf.mxu0 }
 0x458   :  { %v3229_v16 = vadd.f32 %v3228_v14, %v3188_v12  ;;  %v3192_v33 = vpop.f32.mrf.mxu1 }
 0x459   :  { %v3230_v18 = vpop.f32.mrf.mxu0 }
 0x45a   :  { %v3231_v19 = vadd.f32 %v3230_v18, %v3190_v15  ;;  %v3237_v59 = vmax.f32 %v3229_v16, 0.0 }
 0x45b   :  { %v3232_v20 = vpop.f32.mrf.mxu0 }
 0x45c   :  { %v3238_v21 = vmax.f32 %v3231_v19, 0.0  ;;  %v3241_v23 = vpack.c.bf16 %v3237_v59, %v3237_v59 }
 0x45d   :  { %v3233_v22 = vpop.f32.mrf.mxu0 }
 0x45e   :  { %v3242_v5 = vpack.c.bf16 %v3238_v21, %v3238_v21 }
 0x460   :  { %3578 = vmatprep.mubr.bf16.mxu0 %v3242_v5 }
 0x461   :  { %3579 = vmatmul.mubr.bf16.vlgmr.msra.gmra.mxu0 %v3241_v23 }
 0x4dc   :  { %v4094_v60 = vpop.f32.mrf.mxu1 }
 0x4de   :  { %v4095_v17 = vpop.f32.mrf.mxu1 }
 0x4df   :  { %v4096_v24 = vadd.f32 %v4095_v17, %v4094_v60 }
 0x4e0   :  { %v4097_v25 = vpop.f32.mrf.mxu1 }
 0x4e1   :  { %v3541_v31 = vadd.f32 %v4096_v24, %v3980_v27 }
 0x4e2   :  { %v4098_v26 = vpop.f32.mrf.mxu1 }
 0x521   :  { %v4116_v28 = vpop.f32.mrf.mxu0 }
 0x523   :  { %v4117_v29 = vpop.f32.mrf.mxu0 }
 0x524   :  { %v4118_v32 = vadd.f32 %v4117_v29, %v4116_v28 }
 0x525   :  { %v4119_v34 = vpop.f32.mrf.mxu0 }
 0x526   :  { %v3581_v35 = vadd.f32 %v4118_v32, %v3541_v31 }
 0x527   :  { %v4120_v36 = vpop.f32.mrf.mxu0 }
 0x528   :  { %v3587_v37 = vmin.f32 %v3581_v35, 20.0  ;;  %vm3586_vm3 = vcmp.gt.f32.partialorder %v3581_v35, 20.0 }
 0x52a   :  { %v3588_v39 = vmul.f32 1.442695, %v3587_v37 }
 0x52c   :  { %4734 = vpow2.f32 %v3588_v39 }
 0x539   :  { %v4735_v40 = vpop.eup %4734 }
 0x53a   :  { %v3590_v41 = vadd.f32 1.0, %v4735_v40  ;;  %v3593_v42 = vmul.f32 -0.5, %v4735_v40  ;;  %v3596_v44 = vand.u32 2147483647, %v4735_v40 }
 0x53c   :  { %4736 = vlog2.f32 %v3590_v41  ;;  %v3594_v43 = vadd.f32 1.0, %v3593_v42  ;;  %vm3597_vm2 = vcmp.lt.f32.partialorder %v3596_v44, 0.0004427343 }
 0x53e   :  { %v3595_v46 = vmul.f32 %v4735_v40, %v3594_v43 }
 0x549   :  { %v4737_v57 = vpop.eup %4736 }
 0x54a   :  { %v3592_v45 = vmul.f32 0.6931472, %v4737_v57 }
 0x54c   :  { %v3598_v47 = vsel %vm3597_vm2, %v3595_v46, %v3592_v45 }
 0x54d   :  { %v3599_v48 = vsel %vm3586_vm3, %v3581_v35, %v3598_v47 }
 0x54e   :  { %3600 = vst [vmem:[#allocation16] sm:$0xff] %v3599_v48 }
 0x54f   :  { %4909 = shalt.err (!%p4906_p2)
}
 0x550   :  { %3610 = dma.vmem_to_hbm [thread:$0]  %s3608_s23, 128, %s5151_s11, [#allocation4]  }
 0x551   :  { %4928 = dma.done.wait [#allocation4], 128  }
 0x552   :  { %4929 = vsyncadd [#allocation4], 4294967168 }
 0x553   :  { %3614 = vsyncpa [#allocation3], 1 }
 0x554   :  { %3615 = vsyncpa [#allocation6], 1 }
 0x555   :  { %3616 = vsyncpa [#allocation9], 1 }
 0x556   :  { %3617 = vsyncpa [#allocation12], 1 }
 0x557   :  { %3618 = vsyncpa [#allocation15], 1 }
 0x558   :  { %3619 = vsyncpa [#allocation4], 1 }

</bundles_post_ra>
